<compile_context>
chip_gen: v7x
topology: tpu7x:2x2x1
jax: 0.10.0
libtpu: 0.0.40
codegen_flags: <defaults>
</compile_context>

<pallas_src>
import functools

import jax
import jax.numpy as jnp
from jax import lax
from jax.experimental import pallas as pl
from jax.experimental.pallas import tpu as pltpu


def _round_up(v, m):
    return (v + m - 1) // m * m


def _mbconv_kernel(*refs, kernel_size, stride, use_se, identity, left_off):
    if use_se:
        (x_ref, w1_ref, b1_ref, wdw_ref, b2_ref,
         wse1_ref, bse_ref, wse2_ref,
         wp_ref, bp_ref, out_ref, hp_ref) = refs
    else:
        (x_ref, w1_ref, b1_ref, wdw_ref, b2_ref,
         wp_ref, bp_ref, out_ref, hp_ref) = refs

    k = kernel_size
    p = k // 2
    L = left_off                                       # aligned interior column offset
    x = x_ref[0].astype(jnp.float32)                   # (H, W, Cin)
    H, W, Cin = x.shape
    Cexp = w1_ref.shape[1]
    Cout = wp_ref.shape[1]
    Wp = hp_ref.shape[1]                               # round_up(L + W + p, 8)

    # ---- inverted bottleneck: 1x1 conv (BN scale folded into w1) + offset + ReLU6
    h = jnp.dot(x.reshape(H * W, Cin), w1_ref[...],
                preferred_element_type=jnp.float32)
    h = jnp.clip(h + b1_ref[...], 0.0, 6.0).reshape(H, W, Cexp)

    # ---- depthwise kxk conv on a zero-padded VMEM scratch
    # Zero only the halo strips the taps read (aligned sublane-group strips);
    # re-zero every step so megacore-parallel batch sharding stays correct.
    if p > 0:
        zrow = jnp.zeros((p, Wp, Cexp), jnp.float32)
        hp_ref[0:p, :, :] = zrow                                         # top halo rows
        hp_ref[p + H:H + 2 * p, :, :] = zrow                             # bottom halo rows
        hp_ref[p:p + H, 0:L, :] = jnp.zeros((H, L, Cexp), jnp.float32)   # left (aligned)
        hp_ref[p:p + H, L + W:Wp, :] = jnp.zeros((H, Wp - L - W, Cexp),
                                                 jnp.float32)            # right (aligned)
    # Interior store starts at column L (multiple of 8) -> no sublane relayout.
    hp_ref[p:p + H, L:L + W, :] = h
    hp = hp_ref[...]                                    # (H+2p, Wp, Cexp)

    wdw = wdw_ref[...]                                  # (k*k, Cexp), BN scale folded
    # Seed the accumulator with the folded BN offset (saves a mul/add pass later).
    acc = jnp.broadcast_to(b2_ref[...].reshape(1, 1, Cexp),
                           (H, W, Cexp)).astype(jnp.float32)
    for dx in range(k):
        c = L - p + dx                                  # first padded column read by tap dx
        if c % 8 == 0:
            win, off = hp, c                            # already vreg-aligned: plain slice
        else:
            # Sublane rotation on the XLU (separate issue slot from the VPU MACs),
            # hoisted out of the dy loop; the following [0:W] slice is aligned.
            win, off = pltpu.roll(hp, shift=Wp - c, axis=1), 0
        for dy in range(k):
            t = dy * k + dx
            tap = wdw[t:t + 1, :]                       # (1, Cexp)
            acc = acc + win[dy:dy + H, off:off + W, :] * tap
    if stride > 1:
        # TODO(synk): stride>1 does the full conv then downsamples; correct but
        # wasteful.  Only stride=1 is exercised in this script.
        acc = acc[::stride, ::stride, :]
    Ho, Wo = acc.shape[0], acc.shape[1]
    d = jnp.clip(acc, 0.0, 6.0)                         # BN (folded) + ReLU6

    # ---- squeeze & excite
    if use_se:
        se = jnp.mean(d.reshape(Ho * Wo, Cexp), axis=0, keepdims=True)
        se = jnp.dot(se, wse1_ref[...], preferred_element_type=jnp.float32)
        se = jnp.maximum(se + bse_ref[...], 0.0)        # BN (scale folded) + ReLU
        se = jnp.dot(se, wse2_ref[...], preferred_element_type=jnp.float32)
        se = jnp.clip(se / 6.0 + 0.5, 0.0, 1.0)         # Hardsigmoid
        d = d * se

    # ---- pointwise linear: 1x1 conv (BN scale folded into wp) + offset
    o = jnp.dot(d.reshape(Ho * Wo, Cexp), wp_ref[...],
                preferred_element_type=jnp.float32)
    o = (o + bp_ref[...]).reshape(Ho, Wo, Cout)

    if identity:                                        # stride==1 and Cin==Cout
        o = o + x
    out_ref[0] = o.astype(out_ref.dtype)


def mbconv_pallas(x_nhwc, params, *, kernel_size, stride, use_se, identity):
    N, H, W, Cin = x_nhwc.shape
    Cexp = params["w1"].shape[1]
    Cout = params["wp"].shape[1]
    p = kernel_size // 2
    Ho = (H + 2 * p - kernel_size) // stride + 1
    Wo = (W + 2 * p - kernel_size) // stride + 1
    L = _round_up(p, 8) if p > 0 else 0     # sublane-aligned interior column offset
    Wp = _round_up(L + W + p, 8)            # sublane-aligned padded width

    # Fold BatchNorm scales into the conv weights (offsets stay as adds in-kernel).
    w1f = params["w1"] * params["s1"]
    wdwf = params["wdw"] * params["s2"]
    wpf = params["wp"] * params["sp"]

    args = [x_nhwc, w1f, params["b1"], wdwf, params["b2"]]
    if use_se:
        args += [params["wse1"] * params["sse"], params["bse"], params["wse2"]]
    args += [wpf, params["bp"]]

    def full_spec(a):
        nd = a.ndim
        return pl.BlockSpec(a.shape, lambda n, _nd=nd: (0,) * _nd)

    in_specs = [pl.BlockSpec((1, H, W, Cin), lambda n: (n, 0, 0, 0))]
    in_specs += [full_spec(a) for a in args[1:]]
    out_specs = pl.BlockSpec((1, Ho, Wo, Cout), lambda n: (n, 0, 0, 0))

    # Scoped-VMEM limit sized from the working set (lanes rounded to 128, a
    # handful of full-image f32 intermediates + padded scratch), with headroom,
    # capped at v7x's 64 MiB physical VMEM.
    lanes = max(_round_up(Cin, 128), _round_up(Cexp, 128), _round_up(Cout, 128))
    work = 4 * ((H + 2 * p) * Wp + 6 * H * W) * lanes
    vmem_limit = int(min(max(2 * work, 32 * 1024 * 1024), 64 * 1024 * 1024))

    kernel = functools.partial(_mbconv_kernel, kernel_size=kernel_size,
                               stride=stride, use_se=use_se, identity=identity,
                               left_off=L)
    # TODO(synk): for real MBConv sizes (e.g. 112x112, Cexp>=192) add a row-tile
    # grid axis with a k//2 halo so the working set fits v7x's 64 MiB VMEM, and
    # feed bf16 activations to the MXU on v6e/v7x (keep VPU math f32 on v5e).
    return pl.pallas_call(
        kernel,
        grid=(N,),
        in_specs=in_specs,
        out_specs=out_specs,
        out_shape=jax.ShapeDtypeStruct((N, Ho, Wo, Cout), x_nhwc.dtype),
        scratch_shapes=[pltpu.VMEM((H + 2 * p, Wp, Cexp), jnp.float32)],
        compiler_params=pltpu.CompilerParams(
            dimension_semantics=("parallel",),
            vmem_limit_bytes=vmem_limit),
    )(*args)


# ----------------------------- parameter setup ------------------------------

def _fold_bn(gamma, beta, mean, var, eps=1e-5):
    scale = gamma / jnp.sqrt(var + eps)
    offset = beta - mean * scale
    return scale.reshape(1, -1), offset.reshape(1, -1)


def init_params(key, in_size, out_size, expand_ratio, kernel_size):
    expand = int(round(in_size * expand_ratio))
    se_exp = max(expand // 4, 8)
    keys = jax.random.split(key, 9)

    def w(k, shape, fan_in):
        return (jax.random.normal(k, shape, jnp.float32)
                / jnp.sqrt(jnp.float32(fan_in)))

    def bn(k, c):
        k1, k2, k3, k4 = jax.random.split(k, 4)
        gamma = jax.random.uniform(k1, (c,), jnp.float32, 0.5, 1.5)
        beta = 0.1 * jax.random.normal(k2, (c,), jnp.float32)
        mean = 0.1 * jax.random.normal(k3, (c,), jnp.float32)
        var = jax.random.uniform(k4, (c,), jnp.float32, 0.5, 1.5)
        return _fold_bn(gamma, beta, mean, var)

    w1 = w(keys[0], (in_size, expand), in_size)                 # 1x1 expand
    s1, b1 = bn(keys[1], expand)
    # depthwise weight, HWC order: wdw_hwc[ky, kx, c] == torch_w[c, 0, ky, kx]
    wdw_hwc = w(keys[2], (kernel_size, kernel_size, expand),
                kernel_size * kernel_size)
    s2, b2 = bn(keys[3], expand)
    wse1 = w(keys[4], (expand, se_exp), expand)
    sse, bse = bn(keys[5], se_exp)
    wse2 = w(keys[6], (se_exp, expand), se_exp)
    wp = w(keys[7], (expand, out_size), expand)                 # 1x1 project
    sp, bp = bn(keys[8], out_size)

    return dict(w1=w1, s1=s1, b1=b1,
                wdw=wdw_hwc.reshape(kernel_size * kernel_size, expand),
                wdw_hwc=wdw_hwc,
                s2=s2, b2=b2,
                wse1=wse1, sse=sse, bse=bse, wse2=wse2,
                wp=wp, sp=sp, bp=bp)


# --------------------------- pure-JAX reference -----------------------------

def mbconv_reference(x_nhwc, params, *, kernel_size, stride, use_se, identity):
    k = kernel_size
    p = k // 2
    dn = ("NHWC", "HWIO", "NHWC")
    Cexp = params["w1"].shape[1]

    def ch(v):
        return v.reshape(1, 1, 1, -1)

    h = lax.conv_general_dilated(
        x_nhwc, params["w1"].reshape(1, 1, *params["w1"].shape),
        (1, 1), "VALID", dimension_numbers=dn)
    h = jnp.clip(h * ch(params["s1"]) + ch(params["b1"]), 0.0, 6.0)

    wdw = params["wdw_hwc"].reshape(k, k, 1, Cexp)
    d = lax.conv_general_dilated(
        h, wdw, (stride, stride), [(p, p), (p, p)],
        dimension_numbers=dn, feature_group_count=Cexp)
    d = jnp.clip(d * ch(params["s2"]) + ch(params["b2"]), 0.0, 6.0)

    if use_se:
        se = jnp.mean(d, axis=(1, 2), keepdims=True)
        se = jnp.einsum("nijc,ce->nije", se, params["wse1"])
        se = jnp.maximum(se * ch(params["sse"]) + ch(params["bse"]), 0.0)
        se = jnp.einsum("nije,ec->nijc", se, params["wse2"])
        se = jnp.clip(se / 6.0 + 0.5, 0.0, 1.0)
        d = d * se

    o = jnp.einsum("nhwc,co->nhwo", d, params["wp"])
    o = o * ch(params["sp"]) + ch(params["bp"])
    if identity:
        o = o + x_nhwc
    return o


# --------------------------------- driver -----------------------------------

if __name__ == "__main__":
    in_size, out_size = 4, 4
    expand_ratio, kernel_size, use_se, stride = 6, 3, True, 1
    identity = (stride == 1 and in_size == out_size)
    N, H, W = 2, 16, 16

    key = jax.random.PRNGKey(0)
    kx, kp = jax.random.split(key)
    # PyTorch-layout input (NCHW), transposed to kernel layout (NHWC).
    x_nchw = jax.random.normal(kx, (N, in_size, H, W), jnp.float32)
    x_nhwc = jnp.transpose(x_nchw, (0, 2, 3, 1))

    params = init_params(kp, in_size, out_size, expand_ratio, kernel_size)

    out_nhwc = mbconv_pallas(x_nhwc, params, kernel_size=kernel_size,
                             stride=stride, use_se=use_se, identity=identity)
    out_nhwc = jax.block_until_ready(out_nhwc)

    ref = mbconv_reference(x_nhwc, params, kernel_size=kernel_size,
                           stride=stride, use_se=use_se, identity=identity)
    max_err = float(jnp.max(jnp.abs(out_nhwc - ref)))
    assert jnp.allclose(out_nhwc, ref, rtol=1e-3, atol=1e-3), max_err

    out_nchw = jnp.transpose(out_nhwc, (0, 3, 1, 2))  # back to PyTorch NCHW
    jax.block_until_ready(out_nchw)
    print("KERNEL_OK")
</pallas_src>

<mosaic_0001>
module attributes {stable_mosaic.version = 11 : i64} {
  func.func @_mbconv_kernel(%arg0: i32, %arg1: memref<1x16x16x4xf32, #tpu.memory_space<vmem>>, %arg2: memref<4x24xf32, #tpu.memory_space<vmem>>, %arg3: memref<1x24xf32, #tpu.memory_space<vmem>>, %arg4: memref<9x24xf32, #tpu.memory_space<vmem>>, %arg5: memref<1x24xf32, #tpu.memory_space<vmem>>, %arg6: memref<24x8xf32, #tpu.memory_space<vmem>>, %arg7: memref<1x8xf32, #tpu.memory_space<vmem>>, %arg8: memref<8x24xf32, #tpu.memory_space<vmem>>, %arg9: memref<24x4xf32, #tpu.memory_space<vmem>>, %arg10: memref<1x4xf32, #tpu.memory_space<vmem>>, %arg11: memref<1x16x16x4xf32, #tpu.memory_space<vmem>>, %arg12: memref<18x32x24xf32, #tpu.memory_space<vmem>>) attributes {dimension_semantics = [#tpu.dimension_semantics<parallel>], iteration_bounds = array<i64: 2>, scalar_prefetch = 0 : i64, scratch_operands = 1 : i64, tpu.core_type = #tpu.core_type<tc>, window_params = [{transform_indices = @transform_0, window_bounds = array<i64: 1, 16, 16, 4>}, {pipeline_mode = #tpu.pipeline_mode<synchronous>, transform_indices = @transform_1, window_bounds = array<i64: 4, 24>}, {pipeline_mode = #tpu.pipeline_mode<synchronous>, transform_indices = @transform_2, window_bounds = array<i64: 1, 24>}, {pipeline_mode = #tpu.pipeline_mode<synchronous>, transform_indices = @transform_3, window_bounds = array<i64: 9, 24>}, {pipeline_mode = #tpu.pipeline_mode<synchronous>, transform_indices = @transform_4, window_bounds = array<i64: 1, 24>}, {pipeline_mode = #tpu.pipeline_mode<synchronous>, transform_indices = @transform_5, window_bounds = array<i64: 24, 8>}, {pipeline_mode = #tpu.pipeline_mode<synchronous>, transform_indices = @transform_6, window_bounds = array<i64: 1, 8>}, {pipeline_mode = #tpu.pipeline_mode<synchronous>, transform_indices = @transform_7, window_bounds = array<i64: 8, 24>}, {pipeline_mode = #tpu.pipeline_mode<synchronous>, transform_indices = @transform_8, window_bounds = array<i64: 24, 4>}, {pipeline_mode = #tpu.pipeline_mode<synchronous>, transform_indices = @transform_9, window_bounds = array<i64: 1, 4>}, {transform_indices = @transform_10, window_bounds = array<i64: 1, 16, 16, 4>}]} {
    %c0 = arith.constant 0 : index
    %c0_0 = arith.constant 0 : index
    %c0_1 = arith.constant 0 : index
    %c0_2 = arith.constant 0 : index
    %0 = vector.load %arg1[%c0, %c0_0, %c0_1, %c0_2] : memref<1x16x16x4xf32, #tpu.memory_space<vmem>>, vector<1x16x16x4xf32>
    %1 = vector.shape_cast %0 : vector<1x16x16x4xf32> to vector<16x16x4xf32>
    %2 = vector.shape_cast %1 : vector<16x16x4xf32> to vector<256x4xf32>
    %c0_3 = arith.constant 0 : index
    %c0_4 = arith.constant 0 : index
    %3 = vector.load %arg2[%c0_3, %c0_4] : memref<4x24xf32, #tpu.memory_space<vmem>>, vector<4x24xf32>
    %cst = arith.constant dense<0.000000e+00> : vector<256x24xf32>
    %4 = tpu.matmul %2, %3, %cst {dimension_numbers = #tpu.dot_dimension_numbers<[1], [0], [0], [1], [0, 0, 1, 1], [], []>} : vector<256x4xf32>, vector<4x24xf32>, vector<256x24xf32> -> vector<256x24xf32>
    %c0_5 = arith.constant 0 : index
    %c0_6 = arith.constant 0 : index
    %5 = vector.load %arg3[%c0_5, %c0_6] : memref<1x24xf32, #tpu.memory_space<vmem>>, vector<1x24xf32>
    %6 = vector.broadcast %5 : vector<1x24xf32> to vector<256x24xf32>
    %7 = arith.addf %4, %6 : vector<256x24xf32>
    %cst_7 = arith.constant 0.000000e+00 : f32
    %cst_8 = arith.constant 6.000000e+00 : f32
    %8 = vector.broadcast %cst_7 : f32 to vector<256x24xf32>
    %9 = arith.maximumf %8, %7 : vector<256x24xf32>
    %10 = vector.broadcast %cst_8 : f32 to vector<256x24xf32>
    %11 = arith.minimumf %10, %9 : vector<256x24xf32>
    %12 = vector.shape_cast %11 : vector<256x24xf32> to vector<16x16x24xf32>
    %cst_9 = arith.constant 0.000000e+00 : f32
    %13 = vector.broadcast %cst_9 : f32 to vector<1x32x24xf32>
    %c0_10 = arith.constant 0 : index
    %c0_11 = arith.constant 0 : index
    %c0_12 = arith.constant 0 : index
    %14 = vector.load %arg12[%c0_10, %c0_11, %c0_12] : memref<18x32x24xf32, #tpu.memory_space<vmem>>, vector<1x32x24xf32>
    tpu.vector_store %arg12[%c0_10, %c0_11, %c0_12], %13 {strides = array<i32>} : memref<18x32x24xf32, #tpu.memory_space<vmem>>, vector<1x32x24xf32>,
    %c17 = arith.constant 17 : index
    %c0_13 = arith.constant 0 : index
    %c0_14 = arith.constant 0 : index
    %15 = vector.load %arg12[%c17, %c0_13, %c0_14] : memref<18x32x24xf32, #tpu.memory_space<vmem>>, vector<1x32x24xf32>
    tpu.vector_store %arg12[%c17, %c0_13, %c0_14], %13 {strides = array<i32>} : memref<18x32x24xf32, #tpu.memory_space<vmem>>, vector<1x32x24xf32>,
    %cst_15 = arith.constant 0.000000e+00 : f32
    %16 = vector.broadcast %cst_15 : f32 to vector<16x8x24xf32>
    %c1 = arith.constant 1 : index
    %c0_16 = arith.constant 0 : index
    %c0_17 = arith.constant 0 : index
    %17 = vector.load %arg12[%c1, %c0_16, %c0_17] : memref<18x32x24xf32, #tpu.memory_space<vmem>>, vector<16x8x24xf32>
    tpu.vector_store %arg12[%c1, %c0_16, %c0_17], %16 {strides = array<i32>} : memref<18x32x24xf32, #tpu.memory_space<vmem>>, vector<16x8x24xf32>,
    %cst_18 = arith.constant 0.000000e+00 : f32
    %18 = vector.broadcast %cst_18 : f32 to vector<16x8x24xf32>
    %c1_19 = arith.constant 1 : index
    %c24 = arith.constant 24 : index
    %c0_20 = arith.constant 0 : index
    %19 = vector.load %arg12[%c1_19, %c24, %c0_20] : memref<18x32x24xf32, #tpu.memory_space<vmem>>, vector<16x8x24xf32>
    tpu.vector_store %arg12[%c1_19, %c24, %c0_20], %18 {strides = array<i32>} : memref<18x32x24xf32, #tpu.memory_space<vmem>>, vector<16x8x24xf32>,
    %c1_21 = arith.constant 1 : index
    %c8 = arith.constant 8 : index
    %c0_22 = arith.constant 0 : index
    %20 = vector.load %arg12[%c1_21, %c8, %c0_22] : memref<18x32x24xf32, #tpu.memory_space<vmem>>, vector<16x16x24xf32>
    tpu.vector_store %arg12[%c1_21, %c8, %c0_22], %12 {strides = array<i32>} : memref<18x32x24xf32, #tpu.memory_space<vmem>>, vector<16x16x24xf32>,
    %c0_23 = arith.constant 0 : index
    %c0_24 = arith.constant 0 : index
    %c0_25 = arith.constant 0 : index
    %21 = vector.load %arg12[%c0_23, %c0_24, %c0_25] : memref<18x32x24xf32, #tpu.memory_space<vmem>>, vector<18x32x24xf32>
    %c0_26 = arith.constant 0 : index
    %c0_27 = arith.constant 0 : index
    %22 = vector.load %arg4[%c0_26, %c0_27] : memref<9x24xf32, #tpu.memory_space<vmem>>, vector<9x24xf32>
    %c0_28 = arith.constant 0 : index
    %c0_29 = arith.constant 0 : index
    %23 = vector.load %arg5[%c0_28, %c0_29] : memref<1x24xf32, #tpu.memory_space<vmem>>, vector<1x24xf32>
    %24 = vector.shape_cast %23 : vector<1x24xf32> to vector<1x1x24xf32>
    %25 = vector.shape_cast %24 : vector<1x1x24xf32> to vector<1x1x24xf32>
    %26 = vector.broadcast %25 : vector<1x1x24xf32> to vector<16x16x24xf32>
    %c25_i32 = arith.constant 25 : i32
    %27 = tpu.dynamic_rotate %21 by %c25_i32 dim 1 : vector<18x32x24xf32>, i32 -> vector<18x32x24xf32>
    %28 = vector.extract_strided_slice %22 {offsets = [0, 0], sizes = [1, 24], strides = [1, 1]} : vector<9x24xf32> to vector<1x24xf32>
    %29 = vector.extract_strided_slice %27 {offsets = [0, 0, 0], sizes = [16, 16, 24], strides = [1, 1, 1]} : vector<18x32x24xf32> to vector<16x16x24xf32>
    %30 = vector.shape_cast %28 : vector<1x24xf32> to vector<1x1x24xf32>
    %31 = vector.broadcast %30 : vector<1x1x24xf32> to vector<16x16x24xf32>
    %32 = arith.mulf %29, %31 : vector<16x16x24xf32>
    %33 = arith.addf %26, %32 : vector<16x16x24xf32>
    %34 = vector.extract_strided_slice %22 {offsets = [3, 0], sizes = [1, 24], strides = [1, 1]} : vector<9x24xf32> to vector<1x24xf32>
    %35 = vector.extract_strided_slice %27 {offsets = [1, 0, 0], sizes = [16, 16, 24], strides = [1, 1, 1]} : vector<18x32x24xf32> to vector<16x16x24xf32>
    %36 = vector.shape_cast %34 : vector<1x24xf32> to vector<1x1x24xf32>
    %37 = vector.broadcast %36 : vector<1x1x24xf32> to vector<16x16x24xf32>
    %38 = arith.mulf %35, %37 : vector<16x16x24xf32>
    %39 = arith.addf %33, %38 : vector<16x16x24xf32>
    %40 = vector.extract_strided_slice %22 {offsets = [6, 0], sizes = [1, 24], strides = [1, 1]} : vector<9x24xf32> to vector<1x24xf32>
    %41 = vector.extract_strided_slice %27 {offsets = [2, 0, 0], sizes = [16, 16, 24], strides = [1, 1, 1]} : vector<18x32x24xf32> to vector<16x16x24xf32>
    %42 = vector.shape_cast %40 : vector<1x24xf32> to vector<1x1x24xf32>
    %43 = vector.broadcast %42 : vector<1x1x24xf32> to vector<16x16x24xf32>
    %44 = arith.mulf %41, %43 : vector<16x16x24xf32>
    %45 = arith.addf %39, %44 : vector<16x16x24xf32>
    %46 = vector.extract_strided_slice %22 {offsets = [1, 0], sizes = [1, 24], strides = [1, 1]} : vector<9x24xf32> to vector<1x24xf32>
    %47 = vector.extract_strided_slice %21 {offsets = [0, 8, 0], sizes = [16, 16, 24], strides = [1, 1, 1]} : vector<18x32x24xf32> to vector<16x16x24xf32>
    %48 = vector.shape_cast %46 : vector<1x24xf32> to vector<1x1x24xf32>
    %49 = vector.broadcast %48 : vector<1x1x24xf32> to vector<16x16x24xf32>
    %50 = arith.mulf %47, %49 : vector<16x16x24xf32>
    %51 = arith.addf %45, %50 : vector<16x16x24xf32>
    %52 = vector.extract_strided_slice %22 {offsets = [4, 0], sizes = [1, 24], strides = [1, 1]} : vector<9x24xf32> to vector<1x24xf32>
    %53 = vector.extract_strided_slice %21 {offsets = [1, 8, 0], sizes = [16, 16, 24], strides = [1, 1, 1]} : vector<18x32x24xf32> to vector<16x16x24xf32>
    %54 = vector.shape_cast %52 : vector<1x24xf32> to vector<1x1x24xf32>
    %55 = vector.broadcast %54 : vector<1x1x24xf32> to vector<16x16x24xf32>
    %56 = arith.mulf %53, %55 : vector<16x16x24xf32>
    %57 = arith.addf %51, %56 : vector<16x16x24xf32>
    %58 = vector.extract_strided_slice %22 {offsets = [7, 0], sizes = [1, 24], strides = [1, 1]} : vector<9x24xf32> to vector<1x24xf32>
    %59 = vector.extract_strided_slice %21 {offsets = [2, 8, 0], sizes = [16, 16, 24], strides = [1, 1, 1]} : vector<18x32x24xf32> to vector<16x16x24xf32>
    %60 = vector.shape_cast %58 : vector<1x24xf32> to vector<1x1x24xf32>
    %61 = vector.broadcast %60 : vector<1x1x24xf32> to vector<16x16x24xf32>
    %62 = arith.mulf %59, %61 : vector<16x16x24xf32>
    %63 = arith.addf %57, %62 : vector<16x16x24xf32>
    %c23_i32 = arith.constant 23 : i32
    %64 = tpu.dynamic_rotate %21 by %c23_i32 dim 1 : vector<18x32x24xf32>, i32 -> vector<18x32x24xf32>
    %65 = vector.extract_strided_slice %22 {offsets = [2, 0], sizes = [1, 24], strides = [1, 1]} : vector<9x24xf32> to vector<1x24xf32>
    %66 = vector.extract_strided_slice %64 {offsets = [0, 0, 0], sizes = [16, 16, 24], strides = [1, 1, 1]} : vector<18x32x24xf32> to vector<16x16x24xf32>
    %67 = vector.shape_cast %65 : vector<1x24xf32> to vector<1x1x24xf32>
    %68 = vector.broadcast %67 : vector<1x1x24xf32> to vector<16x16x24xf32>
    %69 = arith.mulf %66, %68 : vector<16x16x24xf32>
    %70 = arith.addf %63, %69 : vector<16x16x24xf32>
    %71 = vector.extract_strided_slice %22 {offsets = [5, 0], sizes = [1, 24], strides = [1, 1]} : vector<9x24xf32> to vector<1x24xf32>
    %72 = vector.extract_strided_slice %64 {offsets = [1, 0, 0], sizes = [16, 16, 24], strides = [1, 1, 1]} : vector<18x32x24xf32> to vector<16x16x24xf32>
    %73 = vector.shape_cast %71 : vector<1x24xf32> to vector<1x1x24xf32>
    %74 = vector.broadcast %73 : vector<1x1x24xf32> to vector<16x16x24xf32>
    %75 = arith.mulf %72, %74 : vector<16x16x24xf32>
    %76 = arith.addf %70, %75 : vector<16x16x24xf32>
    %77 = vector.extract_strided_slice %22 {offsets = [8, 0], sizes = [1, 24], strides = [1, 1]} : vector<9x24xf32> to vector<1x24xf32>
    %78 = vector.extract_strided_slice %64 {offsets = [2, 0, 0], sizes = [16, 16, 24], strides = [1, 1, 1]} : vector<18x32x24xf32> to vector<16x16x24xf32>
    %79 = vector.shape_cast %77 : vector<1x24xf32> to vector<1x1x24xf32>
    %80 = vector.broadcast %79 : vector<1x1x24xf32> to vector<16x16x24xf32>
    %81 = arith.mulf %78, %80 : vector<16x16x24xf32>
    %82 = arith.addf %76, %81 : vector<16x16x24xf32>
    %cst_30 = arith.constant 0.000000e+00 : f32
    %cst_31 = arith.constant 6.000000e+00 : f32
    %83 = vector.broadcast %cst_30 : f32 to vector<16x16x24xf32>
    %84 = arith.maximumf %83, %82 : vector<16x16x24xf32>
    %85 = vector.broadcast %cst_31 : f32 to vector<16x16x24xf32>
    %86 = arith.minimumf %85, %84 : vector<16x16x24xf32>
    %87 = vector.shape_cast %86 : vector<16x16x24xf32> to vector<256x24xf32>
    %cst_32 = arith.constant dense<0.000000e+00> : vector<24xf32>
    %88 = vector.multi_reduction <add>, %87, %cst_32 [0] : vector<256x24xf32> to vector<24xf32>
    %89 = vector.shape_cast %88 : vector<24xf32> to vector<1x24xf32>
    %cst_33 = arith.constant 2.560000e+02 : f32
    %90 = vector.broadcast %cst_33 : f32 to vector<1x24xf32>
    %91 = arith.divf %89, %90 : vector<1x24xf32>
    %c0_34 = arith.constant 0 : index
    %c0_35 = arith.constant 0 : index
    %92 = vector.load %arg6[%c0_34, %c0_35] : memref<24x8xf32, #tpu.memory_space<vmem>>, vector<24x8xf32>
    %cst_36 = arith.constant dense<0.000000e+00> : vector<1x8xf32>
    %93 = tpu.matmul %91, %92, %cst_36 {dimension_numbers = #tpu.dot_dimension_numbers<[1], [0], [0], [1], [0, 0, 1, 1], [], []>} : vector<1x24xf32>, vector<24x8xf32>, vector<1x8xf32> -> vector<1x8xf32>
    %c0_37 = arith.constant 0 : index
    %c0_38 = arith.constant 0 : index
    %94 = vector.load %arg7[%c0_37, %c0_38] : memref<1x8xf32, #tpu.memory_space<vmem>>, vector<1x8xf32>
    %95 = arith.addf %93, %94 : vector<1x8xf32>
    %cst_39 = arith.constant 0.000000e+00 : f32
    %96 = vector.broadcast %cst_39 : f32 to vector<1x8xf32>
    %97 = arith.maximumf %95, %96 : vector<1x8xf32>
    %c0_40 = arith.constant 0 : index
    %c0_41 = arith.constant 0 : index
    %98 = vector.load %arg8[%c0_40, %c0_41] : memref<8x24xf32, #tpu.memory_space<vmem>>, vector<8x24xf32>
    %cst_42 = arith.constant dense<0.000000e+00> : vector<1x24xf32>
    %99 = tpu.matmul %97, %98, %cst_42 {dimension_numbers = #tpu.dot_dimension_numbers<[1], [0], [0], [1], [0, 0, 1, 1], [], []>} : vector<1x8xf32>, vector<8x24xf32>, vector<1x24xf32> -> vector<1x24xf32>
    %cst_43 = arith.constant 6.000000e+00 : f32
    %100 = vector.broadcast %cst_43 : f32 to vector<1x24xf32>
    %101 = arith.divf %99, %100 : vector<1x24xf32>
    %cst_44 = arith.constant 5.000000e-01 : f32
    %102 = vector.broadcast %cst_44 : f32 to vector<1x24xf32>
    %103 = arith.addf %101, %102 : vector<1x24xf32>
    %cst_45 = arith.constant 0.000000e+00 : f32
    %cst_46 = arith.constant 1.000000e+00 : f32
    %104 = vector.broadcast %cst_45 : f32 to vector<1x24xf32>
    %105 = arith.maximumf %104, %103 : vector<1x24xf32>
    %106 = vector.broadcast %cst_46 : f32 to vector<1x24xf32>
    %107 = arith.minimumf %106, %105 : vector<1x24xf32>
    %108 = vector.shape_cast %107 : vector<1x24xf32> to vector<1x1x24xf32>
    %109 = vector.broadcast %108 : vector<1x1x24xf32> to vector<16x16x24xf32>
    %110 = arith.mulf %86, %109 : vector<16x16x24xf32>
    %111 = vector.shape_cast %110 : vector<16x16x24xf32> to vector<256x24xf32>
    %c0_47 = arith.constant 0 : index
    %c0_48 = arith.constant 0 : index
    %112 = vector.load %arg9[%c0_47, %c0_48] : memref<24x4xf32, #tpu.memory_space<vmem>>, vector<24x4xf32>
    %cst_49 = arith.constant dense<0.000000e+00> : vector<256x4xf32>
    %113 = tpu.matmul %111, %112, %cst_49 {dimension_numbers = #tpu.dot_dimension_numbers<[1], [0], [0], [1], [0, 0, 1, 1], [], []>} : vector<256x24xf32>, vector<24x4xf32>, vector<256x4xf32> -> vector<256x4xf32>
    %c0_50 = arith.constant 0 : index
    %c0_51 = arith.constant 0 : index
    %114 = vector.load %arg10[%c0_50, %c0_51] : memref<1x4xf32, #tpu.memory_space<vmem>>, vector<1x4xf32>
    %115 = vector.broadcast %114 : vector<1x4xf32> to vector<256x4xf32>
    %116 = arith.addf %113, %115 : vector<256x4xf32>
    %117 = vector.shape_cast %116 : vector<256x4xf32> to vector<16x16x4xf32>
    %118 = arith.addf %117, %1 : vector<16x16x4xf32>
    %c0_52 = arith.constant 0 : index
    %c0_53 = arith.constant 0 : index
    %c0_54 = arith.constant 0 : index
    %c0_55 = arith.constant 0 : index
    %119 = vector.load %arg11[%c0_52, %c0_53, %c0_54, %c0_55] : memref<1x16x16x4xf32, #tpu.memory_space<vmem>>, vector<1x16x16x4xf32>
    %120 = vector.shape_cast %119 : vector<1x16x16x4xf32> to vector<16x16x4xf32>
    %121 = vector.shape_cast %118 : vector<16x16x4xf32> to vector<1x16x16x4xf32>
    tpu.vector_store %arg11[%c0_52, %c0_53, %c0_54, %c0_55], %121 {strides = array<i32>} : memref<1x16x16x4xf32, #tpu.memory_space<vmem>>, vector<1x16x16x4xf32>,
    return
  }
  func.func @transform_0(%arg0: i32) -> (i32, i32, i32, i32) {
    %c0_i32 = arith.constant 0 : i32
    %c0_i32_0 = arith.constant 0 : i32
    %c0_i32_1 = arith.constant 0 : i32
    %c0_i32_2 = arith.constant 0 : i32
    return %arg0, %c0_i32, %c0_i32_0, %c0_i32_1 : i32, i32, i32, i32
  }
  func.func @transform_1(%arg0: i32) -> (i32, i32) {
    %c0_i32 = arith.constant 0 : i32
    %c0_i32_0 = arith.constant 0 : i32
    %c0_i32_1 = arith.constant 0 : i32
    return %c0_i32, %c0_i32_0 : i32, i32
  }
  func.func @transform_2(%arg0: i32) -> (i32, i32) {
    %c0_i32 = arith.constant 0 : i32
    %c0_i32_0 = arith.constant 0 : i32
    %c0_i32_1 = arith.constant 0 : i32
    return %c0_i32, %c0_i32_0 : i32, i32
  }
  func.func @transform_3(%arg0: i32) -> (i32, i32) {
    %c0_i32 = arith.constant 0 : i32
    %c0_i32_0 = arith.constant 0 : i32
    %c0_i32_1 = arith.constant 0 : i32
    return %c0_i32, %c0_i32_0 : i32, i32
  }
  func.func @transform_4(%arg0: i32) -> (i32, i32) {
    %c0_i32 = arith.constant 0 : i32
    %c0_i32_0 = arith.constant 0 : i32
    %c0_i32_1 = arith.constant 0 : i32
    return %c0_i32, %c0_i32_0 : i32, i32
  }
  func.func @transform_5(%arg0: i32) -> (i32, i32) {
    %c0_i32 = arith.constant 0 : i32
    %c0_i32_0 = arith.constant 0 : i32
    %c0_i32_1 = arith.constant 0 : i32
    return %c0_i32, %c0_i32_0 : i32, i32
  }
  func.func @transform_6(%arg0: i32) -> (i32, i32) {
    %c0_i32 = arith.constant 0 : i32
    %c0_i32_0 = arith.constant 0 : i32
    %c0_i32_1 = arith.constant 0 : i32
    return %c0_i32, %c0_i32_0 : i32, i32
  }
  func.func @transform_7(%arg0: i32) -> (i32, i32) {
    %c0_i32 = arith.constant 0 : i32
    %c0_i32_0 = arith.constant 0 : i32
    %c0_i32_1 = arith.constant 0 : i32
    return %c0_i32, %c0_i32_0 : i32, i32
  }
  func.func @transform_8(%arg0: i32) -> (i32, i32) {
    %c0_i32 = arith.constant 0 : i32
    %c0_i32_0 = arith.constant 0 : i32
    %c0_i32_1 = arith.constant 0 : i32
    return %c0_i32, %c0_i32_0 : i32, i32
  }
  func.func @transform_9(%arg0: i32) -> (i32, i32) {
    %c0_i32 = arith.constant 0 : i32
    %c0_i32_0 = arith.constant 0 : i32
    %c0_i32_1 = arith.constant 0 : i32
    return %c0_i32, %c0_i32_0 : i32, i32
  }
  func.func @transform_10(%arg0: i32) -> (i32, i32, i32, i32) {
    %c0_i32 = arith.constant 0 : i32
    %c0_i32_0 = arith.constant 0 : i32
    %c0_i32_1 = arith.constant 0 : i32
    %c0_i32_2 = arith.constant 0 : i32
    return %arg0, %c0_i32, %c0_i32_0, %c0_i32_1 : i32, i32, i32, i32
  }
}

</mosaic_0001>

<bundles_post_ra>
// kernel: tpu_custom_call.1
= control target key start
LH: loop header
LB: loop body
LE: loop exit
PB: predicated region body
PF: predicated region fallthrough
CT: control target
= control target key end

     0   :  { %s2916_s13 = smov 0   ;;  %s4981_s0 = inlined_call_operand.vmem [shape: f32[2,16,16,4], index: 0, kind: input, shape index: {}]   ;;  %s4982_s1 = inlined_call_operand.vmem [shape: f32[4,24], index: 1, kind: input, shape index: {}]   ;;  %s4983_s2 = inlined_call_operand.vmem [shape: f32[1,24], index: 2, kind: input, shape index: {}]   ;;  %s4984_s3 = inlined_call_operand.vmem [shape: f32[9,24], index: 3, kind: input, shape index: {}]   ;;  %s4985_s4 = inlined_call_operand.vmem [shape: f32[1,24], index: 4, kind: input, shape index: {}]   ;;  %s4986_s5 = inlined_call_operand.vmem [shape: f32[24,8], index: 5, kind: input, shape index: {}]   ;;  %s4987_s6 = inlined_call_operand.vmem [shape: f32[1,8], index: 6, kind: input, shape index: {}]   ;;  %s4988_s7 = inlined_call_operand.vmem [shape: f32[8,24], index: 7, kind: input, shape index: {}]   ;;  %s4989_s8 = inlined_call_operand.vmem [shape: f32[24,4], index: 8, kind: input, shape index: {}]   ;;  %s4990_s9 = inlined_call_operand.vmem [shape: f32[1,4], index: 9, kind: input, shape index: {}]   ;;  %s4991_s10 = inlined_call_operand.vmem [shape: f32[2,16,16,4], index: 10, kind: output, shape index: {}]  }
   0x1 LB: > { %s2521_s14 = sadd.s32 4294967295, %s2856_s13   ;;  %p2525_p0 = scmp.ge.s32.totalorder %s2856_s13, 1  ;;  %s2856_s13 = sphi %s2916_s13, %s20_s13  }
   0x2   : > { %p312_p1 = scmp.lt.s32.totalorder %s2856_s13, 3 }
   0x4   : > { %p313_p2 = pnand %p2525_p0, %p312_p1 }
   0x6   : > { %316 = sbr.rel (%p313_p2) target bundleno = 1233 (0x4d1), region = 60 }
   0xd   : > { %v392_v0 = vld [vmem:[%s4982_s1] sm:$0xf]  ;;  %vm497_vm0 = vcmask 1043456   ;;  %p350_p3 = scmp.lt.s32.totalorder %s2521_s14, 1  ;;  %vm400_vm1 = vcmask 31744   ;;  %vm790_vm2 = vcmask 195584   ;;  %v1000_v35 = vlaneseq }
   0xe   : > { %2679 = vmatprep.subr.msk.mxu0 %vm497_vm0, %v392_v0  ;;  %v4993_v33 = vmov 0.0   ;;  %v3085_v34 = vld [vmem:[%s4983_s2] ss:$0 sm:$0xff]  ;;  %vm2860_vm5 = vmmov 0   ;;  %vm1956_vm6 = vcmask 64512  }
   0xf   : > { %2680 = vmatpush3.msk.msra.mxu0 %vm497_vm0, %v392_v0  ;;  %s5208_s14 = smov (!%p350_p3, %s2521_s14), 1  ;;  %817 = vst.msk [vmem:[#allocation2 + $0x38] sm:$0xff] %vm790_vm2, %v4993_v33  ;;  %791 = vst.msk [vmem:[#allocation2] sm:$0xff] %vm790_vm2, %v4993_v33  ;;  %2738 = vmatprep.subr.mxu1 %v4993_v33  ;;  %v3089_v41 = vshrl.u32 %v1000_v35, 7  ;;  %v3105_v57 = vld [vmem:[%s4984_s3] sm:$0xff] }
  0x10   : > { %s2603_s17 = sshll.u32 %s5208_s14, 8  ;;  %792 = vst.msk [vmem:[#allocation2 + $0x8] sm:$0xff] %vm790_vm2, %v4993_v33  ;;  %793 = vst.msk [vmem:[#allocation2 + $0x10] sm:$0xff] %vm790_vm2, %v4993_v33 }
  0x11   : > { %s2935_s20 = scalar_lea.vmem %s4981_s0, %s2603_s17  ;;  %794 = vst.msk [vmem:[#allocation2 + $0x18] sm:$0xff] %vm790_vm2, %v4993_v33  ;;  %796 = vst.msk [vmem:[#allocation2 + $0x220] sm:$0xff] %vm790_vm2, %v4993_v33  ;;  %v4992_v48 = vsub.s32 0, %v3089_v41  ;;  %vm1002_vm3 = vcmp.lt.s32.totalorder %v3089_v41, 1  ;;  %vm1501_vm4 = vcmp.lt.s32.totalorder %v3089_v41, 7  ;;  %s4849_s23 = scalar_lea.vmem %s4991_s10, %s2603_s17 }
  0x12   : > { %v360_v1 = vld [vmem:[%s2935_s20] sm:$0xff]  ;;  %v361_v2 = vld [vmem:[%s2935_s20 + $0x8] sm:$0xff]  ;;  %v362_v3 = vld [vmem:[%s2935_s20 + $0x10] sm:$0xff]  ;;  %797 = vst.msk [vmem:[#allocation2 + $0x228] sm:$0xff] %vm790_vm2, %v4993_v33 }
  0x13   : > { %2681 = vmatprep.mubr.msk.f32.mxu0 %vm400_vm1, %v360_v1  ;;  %v363_v4 = vld [vmem:[%s2935_s20 + $0x18] sm:$0xff]  ;;  %v364_v5 = vld [vmem:[%s2935_s20 + $0x20] sm:$0xff]  ;;  %v365_v6 = vld [vmem:[%s2935_s20 + $0x28] sm:$0xff]  ;;  %798 = vst.msk [vmem:[#allocation2 + $0x230] sm:$0xff] %vm790_vm2, %v4993_v33  ;;  %v3111_v60 = vrot.slane %v3105_v57, %v4992_v48 }
  0x14   : > { %2682 = vmatmul.mubr.msk.f32.vlgmr.msra.gmra.mrb[0].mxu0 %vm400_vm1, %v361_v2  ;;  %v366_v7 = vld [vmem:[%s2935_s20 + $0x30] sm:$0xff]  ;;  %v367_v8 = vld [vmem:[%s2935_s20 + $0x38] sm:$0xff]  ;;  %v368_v9 = vld [vmem:[%s2935_s20 + $0x40] sm:$0xff]  ;;  %799 = vst.msk [vmem:[#allocation2 + $0x238] sm:$0xff] %vm790_vm2, %v4993_v33 }
  0x15   : > { %2684 = vmatprep.mubr.msk.f32.mxu0 %vm400_vm1, %v362_v3  ;;  %v369_v10 = vld [vmem:[%s2935_s20 + $0x48] sm:$0xff]  ;;  %v370_v11 = vld [vmem:[%s2935_s20 + $0x50] sm:$0xff]  ;;  %v371_v12 = vld [vmem:[%s2935_s20 + $0x58] sm:$0xff]  ;;  %801 = vst.msk [vmem:[#allocation2 + $0x20] sm:$0xff] %vm790_vm2, %v4993_v33  ;;  %v1245_v3 = vsub.s32 1, %v3089_v41 }
  0x16   : > { %v372_v13 = vld [vmem:[%s2935_s20 + $0x60] sm:$0xff]  ;;  %v373_v14 = vld [vmem:[%s2935_s20 + $0x68] sm:$0xff]  ;;  %v374_v15 = vld [vmem:[%s2935_s20 + $0x70] sm:$0xff]  ;;  %802 = vst.msk [vmem:[#allocation2 + $0x40] sm:$0xff] %vm790_vm2, %v4993_v33 }
  0x17   : > { %v375_v16 = vld [vmem:[%s2935_s20 + $0x78] sm:$0xff]  ;;  %v376_v17 = vld [vmem:[%s2935_s20 + $0x80] sm:$0xff]  ;;  %v377_v18 = vld [vmem:[%s2935_s20 + $0x88] sm:$0xff]  ;;  %803 = vst.msk [vmem:[#allocation2 + $0x60] sm:$0xff] %vm790_vm2, %v4993_v33 }
  0x18   : > { %2685 = vmatmul.mubr.msk.f32.gmra.mrb[2].mxu0 %vm400_vm1, %v363_v4  ;;  %v378_v19 = vld [vmem:[%s2935_s20 + $0x90] sm:$0xff]  ;;  %v379_v20 = vld [vmem:[%s2935_s20 + $0x98] sm:$0xff]  ;;  %v380_v21 = vld [vmem:[%s2935_s20 + $0xa0] sm:$0xff]  ;;  %804 = vst.msk [vmem:[#allocation2 + $0x80] sm:$0xff] %vm790_vm2, %v4993_v33  ;;  %v1313_v4 = vsub.s32 4, %v3089_v41 }
  0x19   : > { %2687 = vmatprep.mubr.msk.f32.mxu0 %vm400_vm1, %v364_v5  ;;  %v381_v22 = vld [vmem:[%s2935_s20 + $0xa8] sm:$0xff]  ;;  %v382_v23 = vld [vmem:[%s2935_s20 + $0xb0] sm:$0xff]  ;;  %v383_v24 = vld [vmem:[%s2935_s20 + $0xb8] sm:$0xff]  ;;  %805 = vst.msk [vmem:[#allocation2 + $0xa0] sm:$0xff] %vm790_vm2, %v4993_v33 }
  0x1a   : > { %v384_v25 = vld [vmem:[%s2935_s20 + $0xc0] sm:$0xff]  ;;  %v385_v26 = vld [vmem:[%s2935_s20 + $0xc8] sm:$0xff]  ;;  %v386_v27 = vld [vmem:[%s2935_s20 + $0xd0] sm:$0xff]  ;;  %806 = vst.msk [vmem:[#allocation2 + $0xc0] sm:$0xff] %vm790_vm2, %v4993_v33 }
  0x1b   : > { %v387_v28 = vld [vmem:[%s2935_s20 + $0xd8] sm:$0xff]  ;;  %v388_v29 = vld [vmem:[%s2935_s20 + $0xe0] sm:$0xff]  ;;  %v389_v30 = vld [vmem:[%s2935_s20 + $0xe8] sm:$0xff]  ;;  %807 = vst.msk [vmem:[#allocation2 + $0xe0] sm:$0xff] %vm790_vm2, %v4993_v33 }
  0x1c   : > { %2688 = vmatmul.mubr.msk.f32.gmra.mrb[4].mxu0 %vm400_vm1, %v365_v6  ;;  %v390_v31 = vld [vmem:[%s2935_s20 + $0xf0] sm:$0xff]  ;;  %v391_v32 = vld [vmem:[%s2935_s20 + $0xf8] sm:$0xff]  ;;  %808 = vst.msk [vmem:[#allocation2 + $0x100] sm:$0xff] %vm790_vm2, %v4993_v33  ;;  %809 = vst.msk [vmem:[#allocation2 + $0x120] sm:$0xff] %vm790_vm2, %v4993_v33 }
  0x1d   : > { %2690 = vmatprep.mubr.msk.f32.mxu0 %vm400_vm1, %v366_v7  ;;  %810 = vst.msk [vmem:[#allocation2 + $0x140] sm:$0xff] %vm790_vm2, %v4993_v33  ;;  %811 = vst.msk [vmem:[#allocation2 + $0x160] sm:$0xff] %vm790_vm2, %v4993_v33  ;;  %v865_v42 = vld [vmem:[#allocation2] sm:$0xff]  ;;  %v3091_v43 = vld [vmem:[#allocation2 + $0x8] sm:$0xff] }
  0x1e   : > { %812 = vst.msk [vmem:[#allocation2 + $0x180] sm:$0xff] %vm790_vm2, %v4993_v33  ;;  %813 = vst.msk [vmem:[#allocation2 + $0x1a0] sm:$0xff] %vm790_vm2, %v4993_v33  ;;  %v3093_v45 = vld [vmem:[#allocation2 + $0x10] sm:$0xff]  ;;  %v946_v52 = vrot.slane %v865_v42, 7  ;;  %v964_v53 = vrot.slane %v3091_v43, 7  ;;  %v3122_v7 = vld [vmem:[#allocation2 + $0x38] sm:$0xff] }
  0x1f   : > { %814 = vst.msk [vmem:[#allocation2 + $0x1c0] sm:$0xff] %vm790_vm2, %v4993_v33  ;;  %815 = vst.msk [vmem:[#allocation2 + $0x1e0] sm:$0xff] %vm790_vm2, %v4993_v33  ;;  %v982_v55 = vrot.slane %v3093_v45, 7 }
  0x20   : > { %2691 = vmatmul.mubr.msk.f32.gmra.mrb[6].mxu0 %vm400_vm1, %v367_v8  ;;  %816 = vst.msk [vmem:[#allocation2 + $0x200] sm:$0xff] %vm790_vm2, %v4993_v33  ;;  %818 = vst.msk [vmem:[#allocation2 + $0x58] sm:$0xff] %vm790_vm2, %v4993_v33  ;;  %v1021_v0 = vsel %vm1002_vm3, %v946_v52, %v964_v53  ;;  %v1540_v8 = vsub.s32 2, %v3089_v41 }
  0x21   : > { %2693 = vmatprep.mubr.msk.f32.mxu0 %vm400_vm1, %v368_v9  ;;  %819 = vst.msk [vmem:[#allocation2 + $0x78] sm:$0xff] %vm790_vm2, %v4993_v33  ;;  %820 = vst.msk [vmem:[#allocation2 + $0x98] sm:$0xff] %vm790_vm2, %v4993_v33  ;;  %v1003_v5 = vsel %vm1002_vm3, %v964_v53, %v982_v55  ;;  %v1608_v9 = vsub.s32 5, %v3089_v41  ;;  %v3187_v53 = vld [vmem:[#allocation2 + $0x60] sm:$0xff] }
  0x22   : > { %821 = vst.msk [vmem:[#allocation2 + $0xb8] sm:$0xff] %vm790_vm2, %v4993_v33  ;;  %822 = vst.msk [vmem:[#allocation2 + $0xd8] sm:$0xff] %vm790_vm2, %v4993_v33 }
  0x23   : > { %823 = vst.msk [vmem:[#allocation2 + $0xf8] sm:$0xff] %vm790_vm2, %v4993_v33  ;;  %824 = vst.msk [vmem:[#allocation2 + $0x118] sm:$0xff] %vm790_vm2, %v4993_v33 }
  0x24   : > { %2694 = vmatmul.mubr.msk.f32.gmra.mrb[8].mxu0 %vm400_vm1, %v369_v10  ;;  %825 = vst.msk [vmem:[#allocation2 + $0x138] sm:$0xff] %vm790_vm2, %v4993_v33  ;;  %826 = vst.msk [vmem:[#allocation2 + $0x158] sm:$0xff] %vm790_vm2, %v4993_v33  ;;  %v868_v10 = vld [vmem:[#allocation2 + $0x18] sm:$0xff] }
  0x25   : > { %2696 = vmatprep.mubr.msk.f32.mxu0 %vm400_vm1, %v370_v11  ;;  %827 = vst.msk [vmem:[#allocation2 + $0x178] sm:$0xff] %vm790_vm2, %v4993_v33  ;;  %828 = vst.msk [vmem:[#allocation2 + $0x198] sm:$0xff] %vm790_vm2, %v4993_v33 }
  0x26   : > { %829 = vst.msk [vmem:[#allocation2 + $0x1b8] sm:$0xff] %vm790_vm2, %v4993_v33  ;;  %830 = vst.msk [vmem:[#allocation2 + $0x1d8] sm:$0xff] %vm790_vm2, %v4993_v33 }
  0x27   : > { %831 = vst.msk [vmem:[#allocation2 + $0x1f8] sm:$0xff] %vm790_vm2, %v4993_v33  ;;  %832 = vst.msk [vmem:[#allocation2 + $0x218] sm:$0xff] %vm790_vm2, %v4993_v33  ;;  %v3156_v35 = vld [vmem:[#allocation2 + $0x58] sm:$0xff] }
  0x28   : > { %2697 = vmatmul.mubr.msk.f32.gmra.mrb[10].mxu0 %vm400_vm1, %v371_v12 }
  0x29   : > { %2699 = vmatprep.mubr.msk.f32.mxu0 %vm400_vm1, %v372_v13  ;;  %v869_v13 = vld [vmem:[#allocation2 + $0x20] sm:$0xff] }
  0x2b   : > { %v3261_v33 = vld [vmem:[#allocation2 + $0x158] sm:$0xff] }
  0x2c   : > { %2700 = vmatmul.mubr.msk.f32.gmra.mrb[12].mxu0 %vm400_vm1, %v373_v14  ;;  %v1043_v14 = vmul.f32 %v3111_v60, %v1021_v0  ;;  %5047 = vst [vmem:[#allocation12_spill] sm:$0xff] %v3261_v33 }
  0x2d   : > { %2702 = vmatprep.mubr.msk.f32.mxu0 %vm400_vm1, %v374_v15  ;;  %v1109_v15 = vsub.s32 3, %v3089_v41 }
  0x2f   : > { %v3172_v42 = vrot.slane %v3105_v57, %v1109_v15 }
  0x30   : > { %2703 = vmatmul.mubr.msk.f32.gmra.mrb[14].mxu0 %vm400_vm1, %v375_v16  ;;  %v1381_v16 = vsub.s32 7, %v3089_v41 }
  0x31   : > { %2705 = vmatprep.mubr.msk.f32.mxu0 %vm400_vm1, %v376_v17 }
  0x34   : > { %2706 = vmatmul.mubr.msk.f32.gmra.mrb[16].mxu0 %vm400_vm1, %v377_v18 }
  0x35   : > { %2708 = vmatprep.mubr.msk.f32.mxu0 %vm400_vm1, %v378_v19 }
  0x38   : > { %2709 = vmatmul.mubr.msk.f32.gmra.mrb[18].mxu0 %vm400_vm1, %v379_v20  ;;  %v1044_v20 = vmul.f32 %v3111_v60, %v1003_v5 }
  0x39   : > { %2711 = vmatprep.mubr.msk.f32.mxu0 %vm400_vm1, %v380_v21  ;;  %v1447_v21 = vrot.slane %v3091_v43, 1 }
  0x3c   : > { %2712 = vmatmul.mubr.msk.f32.gmra.mrb[20].mxu0 %vm400_vm1, %v381_v22  ;;  %v1465_v22 = vrot.slane %v3093_v45, 1 }
  0x3d   : > { %2714 = vmatprep.mubr.msk.f32.mxu0 %vm400_vm1, %v382_v23 }
  0x3e   : > { %v1520_v52 = vsel %vm1501_vm4, %v1447_v21, %v1465_v22  ;;  %v3245_v21 = vld [vmem:[#allocation2 + $0x100] sm:$0xff] }
  0x3f   : > { %5044 = vst [vmem:[#allocation9_spill] sm:$0xff] %v3245_v21 }
  0x40   : > { %2715 = vmatmul.mubr.msk.f32.gmra.mrb[22].mxu0 %vm400_vm1, %v383_v24 }
  0x41   : > { %2717 = vmatprep.mubr.msk.f32.mxu0 %vm400_vm1, %v384_v25  ;;  %v3141_v25 = vrot.slane %v3105_v57, %v1245_v3  ;;  %v3272_v3 = vld [vmem:[#allocation2 + $0x140] sm:$0xff] }
  0x42   : > { %5048 = vst [vmem:[#allocation13_spill] sm:$0xff] %v3272_v3  ;;  %v5049_v3 = vrot.slane %v3122_v7, 1 }
  0x44   : > { %2718 = vmatmul.mubr.msk.f32.gmra.mrb[24].mxu0 %vm400_vm1, %v385_v26 }
  0x45   : > { %2720 = vmatprep.mubr.msk.f32.mxu0 %vm400_vm1, %v386_v27 }
  0x48   : > { %2721 = vmatmul.mubr.msk.f32.gmra.mrb[26].mxu0 %vm400_vm1, %v387_v28  ;;  %v3149_v28 = vld [vmem:[%s4985_s4] ss:$0 sm:$0xff] }
  0x49   : > { %2723 = vmatprep.mubr.msk.f32.mxu0 %vm400_vm1, %v388_v29  ;;  %v1483_v29 = vrot.slane %v868_v10, 1 }
  0x4c   : > { %2724 = vmatmul.mubr.msk.f32.gmra.mrb[28].mxu0 %vm400_vm1, %v389_v30  ;;  %v3153_v30 = vrot.slane %v3105_v57, %v1313_v4  ;;  %v3215_v4 = vld [vmem:[#allocation2 + $0xa0] sm:$0xff] }
  0x4d   : > { %2726 = vmatprep.mubr.msk.f32.mxu0 %vm400_vm1, %v390_v31  ;;  %v947_v31 = vrot.slane %v869_v13, 7  ;;  %v3232_v13 = vld [vmem:[#allocation2 + $0xf8] sm:$0xff] }
  0x4e   : > { %5041 = vst [vmem:[#allocation6_spill] sm:$0xff] %v3232_v13 }
  0x50   : > { %2727 = vmatmul.mubr.msk.f32.gmra.mrb[30].mxu0 %vm400_vm1, %v391_v32 }
  0xe7   : > { %v2683_v36 = vpop.f32.mrb[0].mxu0 }
  0xe8   : > { %v573_v37 = vadd.f32 %v2683_v36, %v3085_v34  ;;  %v567_v38 = vpop.f32.mrb[1].mxu0  ;;  %v3158_v36 = vld [vmem:[#allocation2 + $0x40] sm:$0xff] }
  0xe9   : > { %v568_v39 = vadd.f32 %v3085_v34, %v567_v38 }
  0xea   : > { %v727_v40 = vmax.f32 %v573_v37, 0.0  ;;  %v1177_v37 = vsub.s32 6, %v3089_v41 }
  0xeb   : > { %v726_v44 = vmax.f32 %v568_v39, 0.0  ;;  %v2686_v46 = vpop.f32.mrb[2].mxu0  ;;  %v3166_v39 = vrot.slane %v3105_v57, %v1540_v8 }
  0xec   : > { %v759_v47 = vmin.f32 %v727_v40, 6.0  ;;  %v583_v49 = vadd.f32 %v2686_v46, %v3085_v34  ;;  %v577_v50 = vpop.f32.mrb[3].mxu0  ;;  %v3169_v40 = vrot.slane %v3105_v57, %v1608_v9  ;;  %v1248_v9 = vmul.f32 %v3141_v25, %v3093_v45 }
  0xed   : > { %v758_v51 = vmin.f32 %v726_v44, 6.0  ;;  %v578_v54 = vadd.f32 %v3085_v34, %v577_v50  ;;  %5038 = vst [vmem:[#allocation3_spill] sm:$0xff] %v3166_v39  ;;  %v3174_v44 = vld [vmem:[#allocation2 + $0x78] sm:$0xff] }
  0xee   : > { %834 = vst.msk [vmem:[#allocation2 + $0x30] sm:$0xff] %vm790_vm2, %v759_v47  ;;  %v729_v56 = vmax.f32 %v583_v49, 0.0  ;;  %5039 = vst [vmem:[#allocation4_spill] sm:$0xff] %v3169_v40  ;;  %v1075_v47 = vadd.f32 %v3149_v28, %v1043_v14  ;;  %v1076_v49 = vadd.f32 %v3149_v28, %v1044_v20  ;;  %v3234_v14 = vld [vmem:[#allocation2 + $0xe0] sm:$0xff]  ;;  %v3243_v20 = vld [vmem:[#allocation2 + $0x118] sm:$0xff] }
  0xef   : > { %833 = vst.msk [vmem:[#allocation2 + $0x28] sm:$0xff] %vm790_vm2, %v758_v51  ;;  %v728_v58 = vmax.f32 %v578_v54, 0.0  ;;  %v2689_v59 = vpop.f32.mrb[4].mxu0  ;;  %v3183_v51 = vrot.slane %v3105_v57, %v1381_v16  ;;  %5042 = vst [vmem:[#allocation7_spill] sm:$0xff] %v3234_v14 }
  0xf0   : > { %v761_v61 = vmin.f32 %v729_v56, 6.0  ;;  %v593_v62 = vadd.f32 %v2689_v59, %v3085_v34  ;;  %v587_v63 = vpop.f32.mrb[5].mxu0  ;;  %v948_v56 = vrot.slane %v3158_v36, 7  ;;  %v3197_v59 = vld [vmem:[#allocation2 + $0x98] sm:$0xff]  ;;  %5043 = vst [vmem:[#allocation8_spill] sm:$0xff] %v3243_v20 }
  0xf1   : > { %v760_v1 = vmin.f32 %v728_v58, 6.0  ;;  %v588_v2 = vadd.f32 %v3085_v34, %v587_v63  ;;  %v1502_v58 = vsel %vm1501_vm4, %v1465_v22, %v1483_v29  ;;  %v3247_v22 = vld [vmem:[#allocation2 + $0x138] sm:$0xff] }
  0xf2   : > { %836 = vst.msk [vmem:[#allocation2 + $0x50] sm:$0xff] %vm790_vm2, %v761_v61  ;;  %v731_v6 = vmax.f32 %v593_v62, 0.0  ;;  %v3199_v61 = vld [vmem:[#allocation2 + $0x80] sm:$0xff]  ;;  %v3201_v62 = vld [vmem:[#allocation2 + $0xb8] sm:$0xff]  ;;  %v3239_v16 = vmul.f32 %v3166_v39, %v1502_v58  ;;  %5045 = vst [vmem:[#allocation10_spill] sm:$0xff] %v3247_v22 }
  0xf3   : > { %835 = vst.msk [vmem:[#allocation2 + $0x48] sm:$0xff] %vm790_vm2, %v760_v1  ;;  %v730_v11 = vmax.f32 %v588_v2, 0.0  ;;  %v3127_v12 = vpop.f32.mrb[6].mxu0  ;;  %v3208_v1 = vrot.slane %v3105_v57, %v1177_v37  ;;  %v3212_v2 = vmul.f32 %v3141_v25, %v3091_v43  ;;  %v3225_v57 = vmul.f32 %v3166_v39, %v1520_v52 }
  0xf4   : > { %v763_v17 = vmin.f32 %v731_v6, 6.0  ;;  %v3132_v18 = vpop.f32.mrb[7].mxu0  ;;  %v3219_v6 = vld [vmem:[#allocation2 + $0xd8] sm:$0xff] }
  0xf5   : > { %v3134_v19 = vld [vmem:[#allocation2 + $0x30] sm:$0xff]  ;;  %v762_v23 = vmin.f32 %v730_v11, 6.0  ;;  %5040 = vst [vmem:[#allocation5_spill] sm:$0xff] %v3219_v6  ;;  %v3230_v11 = vld [vmem:[#allocation2 + $0xc0] sm:$0xff] }
  0xf6   : > { %v983_v24 = vrot.slane %v3134_v19, 7  ;;  %v3144_v27 = vld [vmem:[#allocation2 + $0x28] sm:$0xff]  ;;  %838 = vst.msk [vmem:[#allocation2 + $0x70] sm:$0xff] %vm790_vm2, %v763_v17  ;;  %v1466_v55 = vrot.slane %v3134_v19, 1  ;;  %v1316_v37 = vmul.f32 %v3153_v30, %v3134_v19 }
  0xf7   : > { %v965_v32 = vrot.slane %v3144_v27, 7  ;;  %837 = vst.msk [vmem:[#allocation2 + $0x68] sm:$0xff] %vm790_vm2, %v762_v23  ;;  %v3162_v38 = vpop.f32.mrb[8].mxu0 }
  0xf8   : > { %v3176_v46 = vpop.f32.mrb[9].mxu0  ;;  %v1503_v22 = vsel %vm1501_vm4, %v1466_v55, %v5049_v3 }
  0xf9   : > { %v3180_v50 = vld [vmem:[#allocation2 + $0x50] sm:$0xff]  ;;  %v3191_v54 = vsel %vm1002_vm3, %v965_v32, %v983_v24  ;;  %v1022_v63 = vsel %vm1002_vm3, %v947_v31, %v965_v32  ;;  %v3253_v32 = vld [vmem:[#allocation2 + $0x120] sm:$0xff] }
  0xfa   : > { %v3205_v0 = vld [vmem:[#allocation2 + $0x48] sm:$0xff]  ;;  %v984_v8 = vrot.slane %v3180_v50, 7  ;;  %v1112_v15 = vmul.f32 %v3172_v42, %v3191_v54  ;;  %v1111_v23 = vmul.f32 %v3172_v42, %v1022_v63  ;;  %5046 = vst [vmem:[#allocation11_spill] sm:$0xff] %v3253_v32  ;;  %v1384_v20 = vmul.f32 %v3183_v51, %v3180_v50 }
  0xfb   : > { %v3217_v5 = vpop.f32.mrb[10].mxu0  ;;  %v966_v24 = vrot.slane %v3205_v0, 7 }
  0xfc   : > { %v3228_v43 = vpop.f32.mrb[11].mxu0  ;;  %v1144_v17 = vadd.f32 %v1112_v15, %v1076_v49  ;;  %v1143_v10 = vadd.f32 %v1111_v23, %v1075_v47  ;;  %v3298_v23 = vmul.f32 %v3141_v25, %v3134_v19  ;;  %v1448_v19 = vrot.slane %v3144_v27, 1 }
  0xfd   : > { %v3265_v45 = vsel %vm1002_vm3, %v966_v24, %v984_v8  ;;  %v3276_v58 = vsel %vm1002_vm3, %v948_v56, %v966_v24  ;;  %v3284_v36 = vld [vmem:[#allocation2 + $0x70] sm:$0xff]  ;;  %v603_v56 = vadd.f32 %v3127_v12, %v3085_v34  ;;  %v598_v24 = vadd.f32 %v3085_v34, %v3132_v18 }
  0xfe   : > { %v1180_v48 = vmul.f32 %v3208_v1, %v3265_v45  ;;  %v1179_v31 = vmul.f32 %v3208_v1, %v3276_v58  ;;  %v3287_v15 = vld [vmem:[#allocation2 + $0x68] sm:$0xff]  ;;  %v1249_v12 = vmul.f32 %v3141_v25, %v3144_v27  ;;  %v1315_v18 = vmul.f32 %v3153_v30, %v3144_v27 }
  0xff   : > { %v3257_v52 = vpop.f32.mrb[12].mxu0  ;;  %v985_v47 = vrot.slane %v3284_v36, 7  ;;  %v1383_v27 = vmul.f32 %v3183_v51, %v3205_v0 }
 0x100   : > { %v3267_v29 = vpop.f32.mrb[13].mxu0  ;;  %v1212_v49 = vadd.f32 %v1180_v48, %v1144_v17  ;;  %v1045_v48 = vmul.f32 %v3111_v60, %v1022_v63  ;;  %v1211_v17 = vadd.f32 %v1179_v31, %v1143_v10  ;;  %v967_v10 = vrot.slane %v3287_v15, 7 }
 0x101   : > { %v1046_v31 = vmul.f32 %v3111_v60, %v3191_v54  ;;  %v1114_v54 = vmul.f32 %v3172_v42, %v3265_v45 }
 0x102   : > { %v1280_v33 = vadd.f32 %v1248_v9, %v1212_v49  ;;  %v1279_v63 = vadd.f32 %v3212_v2, %v1211_v17  ;;  %v1113_v9 = vmul.f32 %v3172_v42, %v3276_v58  ;;  %v1077_v3 = vadd.f32 %v3149_v28, %v1045_v48 }
 0x103   : > { %v3293_v8 = vpop.f32.mrb[14].mxu0  ;;  %v733_v2 = vmax.f32 %v603_v56, 0.0  ;;  %v3334_v21 = vsel %vm1002_vm3, %v967_v10, %v985_v47  ;;  %v1521_v48 = vsel %vm1501_vm4, %v1448_v19, %v1466_v55  ;;  %v1611_v55 = vmul.f32 %v3169_v40, %v1503_v22 }
 0x104   : > { %v3303_v26 = vpop.f32.mrb[15].mxu0  ;;  %v1348_v49 = vadd.f32 %v1316_v37, %v1280_v33  ;;  %v1347_v32 = vadd.f32 %v1315_v18, %v1279_v63  ;;  %v5052_v33 = vrot.slane %v3187_v53, 7  ;;  %v732_v18 = vmax.f32 %v598_v24, 0.0 }
 0x105   : > { %v613_v63 = vadd.f32 %v3162_v38, %v3085_v34  ;;  %v1182_v53 = vmul.f32 %v3208_v1, %v3334_v21  ;;  %v1467_v38 = vrot.slane %v3180_v50, 1  ;;  %v765_v6 = vmin.f32 %v733_v2, 6.0 }
 0x106   : > { %v1416_v13 = vadd.f32 %v1384_v20, %v1348_v49  ;;  %v3340_v37 = vsel %vm1002_vm3, %v5052_v33, %v967_v10  ;;  %v1415_v56 = vadd.f32 %v1383_v27, %v1347_v32  ;;  %v1078_v20 = vadd.f32 %v3149_v28, %v1046_v31 }
 0x107   : > { %v3323_v7 = vpop.f32.mrb[16].mxu0  ;;  %v1145_v49 = vadd.f32 %v1113_v9, %v1077_v3  ;;  %v1181_v47 = vmul.f32 %v3208_v1, %v3340_v37  ;;  %v3354_v10 = vmul.f32 %v3166_v39, %v1503_v22  ;;  %v3359_v32 = vmul.f32 %v3141_v25, %v3180_v50  ;;  %840 = vst.msk [vmem:[#allocation2 + $0x90] sm:$0xff] %vm790_vm2, %v765_v6 }
 0x108   : > { %5050 = vst [vmem:[#allocation14_spill] sm:$0xff] %v3323_v7  ;;  %v3328_v17 = vpop.f32.mrb[17].mxu0  ;;  %v1146_v19 = vadd.f32 %v1114_v54, %v1078_v20  ;;  %v1449_v31 = vrot.slane %v3205_v0, 1  ;;  %v1575_v9 = vadd.f32 %v3239_v16, %v1416_v13  ;;  %v1544_v27 = vmul.f32 %v3166_v39, %v1521_v48  ;;  %v3378_v13 = vld [vmem:[%s4984_s3 + $0x8] ss:$0 sm:$0xff] }
 0x109   : > { %5051 = vst [vmem:[#allocation15_spill] sm:$0xff] %v3328_v17  ;;  %v1213_v3 = vadd.f32 %v1181_v47, %v1145_v49  ;;  %v1318_v33 = vmul.f32 %v3153_v30, %v3180_v50  ;;  %v1574_v22 = vadd.f32 %v3225_v57, %v1415_v56  ;;  %v1610_v20 = vmul.f32 %v3169_v40, %v1521_v48 }
 0x10a   : > { %v1214_v17 = vadd.f32 %v1182_v53, %v1146_v19  ;;  %v5056_v50 = vrot.slane %v3156_v35, 1  ;;  %v735_v16 = vmax.f32 %v613_v63, 0.0  ;;  %v3391_v48 = vsel %vm1501_vm4, %v1449_v31, %v1467_v38 }
 0x10b   : > { %v3351_v14 = vpop.f32.mrb[18].mxu0  ;;  %v1281_v7 = vadd.f32 %v1249_v12, %v1213_v3  ;;  %v608_v12 = vadd.f32 %v3085_v34, %v3176_v46  ;;  %v1643_v56 = vadd.f32 %v1611_v55, %v1575_v9  ;;  %v1385_v35 = vmul.f32 %v3183_v51, %v3287_v15 }
 0x10c   : > { %5053 = vst [vmem:[#allocation16_spill] sm:$0xff] %v3351_v14  ;;  %v3362_v24 = vpop.f32.mrb[19].mxu0  ;;  %v1317_v14 = vmul.f32 %v3153_v30, %v3205_v0  ;;  %v1504_v57 = vsel %vm1501_vm4, %v1467_v38, %v5056_v50  ;;  %v1642_v49 = vadd.f32 %v1610_v20, %v1574_v22  ;;  %v767_v47 = vmin.f32 %v735_v16, 6.0 }
 0x10d   : > { %5054 = vst [vmem:[#allocation17_spill] sm:$0xff] %v3362_v24  ;;  %v764_v24 = vmin.f32 %v732_v18, 6.0  ;;  %v734_v6 = vmax.f32 %v608_v12, 0.0  ;;  %v623_v63 = vadd.f32 %v3217_v5, %v3085_v34  ;;  %v1679_v46 = vmul.f32 %v3378_v13, %v1504_v57 }
 0x10e   : > { %v1349_v18 = vadd.f32 %v1317_v14, %v1281_v7  ;;  %v1282_v53 = vadd.f32 %v3298_v23, %v1214_v17  ;;  %v618_v55 = vadd.f32 %v3085_v34, %v3228_v43  ;;  %v1048_v7 = vmul.f32 %v3111_v60, %v3265_v45  ;;  %842 = vst.msk [vmem:[#allocation2 + $0xb0] sm:$0xff] %vm790_vm2, %v767_v47  ;;  %v3425_v12 = vld [vmem:[#allocation2 + $0x90] sm:$0xff] }
 0x10f   : > { %v3372_v54 = vpop.f32.mrb[20].mxu0  ;;  %839 = vst.msk [vmem:[#allocation2 + $0x88] sm:$0xff] %vm790_vm2, %v764_v24  ;;  %v1678_v38 = vmul.f32 %v3378_v13, %v3391_v48  ;;  %v766_v24 = vmin.f32 %v734_v6, 6.0  ;;  %v737_v5 = vmax.f32 %v623_v63, 0.0  ;;  %v3413_v23 = vmul.f32 %v3141_v25, %v3205_v0 }
 0x110   : > { %5055 = vst [vmem:[#allocation18_spill] sm:$0xff] %v3372_v54  ;;  %v3387_v2 = vpop.f32.mrb[21].mxu0  ;;  %v1417_v19 = vadd.f32 %v1385_v35, %v1349_v18  ;;  %v1468_v43 = vrot.slane %v3284_v36, 1  ;;  %v1450_v17 = vrot.slane %v3287_v15, 1  ;;  %v736_v9 = vmax.f32 %v618_v55, 0.0 }
 0x111   : > { %5057 = vst [vmem:[#allocation19_spill] sm:$0xff] %v3387_v2  ;;  %v1710_v3 = vadd.f32 %v1678_v38, %v1642_v49  ;;  %v1711_v45 = vadd.f32 %v1679_v46, %v1643_v56  ;;  %v3419_v22 = vmul.f32 %v3141_v25, %v3284_v36  ;;  %841 = vst.msk [vmem:[#allocation2 + $0xa8] sm:$0xff] %vm790_vm2, %v766_v24  ;;  %v769_v20 = vmin.f32 %v737_v5, 6.0 }
 0x112   : > { %v3423_v50 = vmul.f32 %v3166_v39, %v1504_v57  ;;  %v1350_v16 = vadd.f32 %v1318_v33, %v1282_v53  ;;  %v1576_v0 = vadd.f32 %v1544_v27, %v1417_v19  ;;  %v768_v18 = vmin.f32 %v736_v9, 6.0 }
 0x113   : > { %v3402_v14 = vpop.f32.mrb[22].mxu0  ;;  %v1613_v49 = vmul.f32 %v3169_v40, %v1504_v57  ;;  %v1047_v56 = vmul.f32 %v3111_v60, %v3276_v58  ;;  %v1080_v47 = vadd.f32 %v3149_v28, %v1048_v7  ;;  %v986_v6 = vrot.slane %v3425_v12, 7  ;;  %844 = vst.msk [vmem:[#allocation2 + $0xd0] sm:$0xff] %vm790_vm2, %v769_v20 }
 0x114   : > { %5058 = vst [vmem:[#allocation20_spill] sm:$0xff] %v3402_v14  ;;  %v3409_v31 = vpop.f32.mrb[23].mxu0  ;;  %v1612_v27 = vmul.f32 %v3169_v40, %v3391_v48  ;;  %v1386_v46 = vmul.f32 %v3183_v51, %v3284_v36  ;;  %v1523_v57 = vsel %vm1501_vm4, %v1450_v17, %v1468_v43  ;;  %843 = vst.msk [vmem:[#allocation2 + $0xc8] sm:$0xff] %vm790_vm2, %v768_v18  ;;  %v1742_v53 = vmax.f32 %v1710_v3, 0.0 }
 0x115   : > { %5059 = vst [vmem:[#allocation21_spill] sm:$0xff] %v3409_v31  ;;  %v1743_v19 = vmax.f32 %v1711_v45, 0.0  ;;  %v1115_v55 = vmul.f32 %v3172_v42, %v3340_v37  ;;  %v1116_v7 = vmul.f32 %v3172_v42, %v3334_v21  ;;  %v5062_v17 = vrot.slane %v3199_v61, 7 }
 0x116   : > { %v3434_v63 = vld [vmem:[#allocation2 + $0x88] sm:$0xff]  ;;  %v1418_v38 = vadd.f32 %v1386_v46, %v1350_v16  ;;  %v1644_v24 = vadd.f32 %v1612_v27, %v1576_v0  ;;  %v1079_v45 = vadd.f32 %v3149_v28, %v1047_v56  ;;  %v1320_v20 = vmul.f32 %v3153_v30, %v3284_v36 }
 0x117   : > { %v3427_v35 = vpop.f32.mrb[24].mxu0  ;;  %v968_v58 = vrot.slane %v3434_v63, 7  ;;  %v3468_v16 = vmul.f32 %v3141_v25, %v3287_v15  ;;  %v1319_v0 = vmul.f32 %v3153_v30, %v3287_v15  ;;  %v5065_v61 = vrot.slane %v3174_v44, 1 }
 0x118   : > { %5060 = vst [vmem:[#allocation22_spill] sm:$0xff] %v3427_v35  ;;  %v3437_v33 = vpop.f32.mrb[25].mxu0  ;;  %v1049_v56 = vmul.f32 %v3111_v60, %v3340_v37  ;;  %v1050_v36 = vmul.f32 %v3111_v60, %v3334_v21  ;;  %v1680_v27 = vmul.f32 %v3378_v13, %v1523_v57  ;;  %v3483_v46 = vmin.f32 %v1743_v19, 6.0 }
 0x119   : > { %5061 = vst [vmem:[#allocation23_spill] sm:$0xff] %v3437_v33  ;;  %v3453_v5 = vsel %vm1002_vm3, %v968_v58, %v986_v6  ;;  %v3459_v9 = vsel %vm1002_vm3, %v5062_v17, %v968_v58  ;;  %v1505_v6 = vsel %vm1501_vm4, %v1468_v43, %v5065_v61  ;;  %v1147_v58 = vadd.f32 %v1115_v55, %v1079_v45  ;;  %v3503_v33 = vld [vmem:[#allocation2 + $0xa8] sm:$0xff] }
 0x11a   : > { %5066 = vst [vmem:[#allocation26_spill] sm:$0xff] %v3483_v46  ;;  %v1183_v15 = vmul.f32 %v3208_v1, %v3459_v9  ;;  %v1184_v44 = vmul.f32 %v3208_v1, %v3453_v5  ;;  %v3489_v17 = vmin.f32 %v1742_v53, 6.0  ;;  %v1148_v43 = vadd.f32 %v1116_v7, %v1080_v47 }
 0x11b   : > { %v3461_v3 = vpop.f32.mrb[26].mxu0  ;;  %v1577_v61 = vadd.f32 %v3354_v10, %v1418_v38  ;;  %v1712_v37 = vadd.f32 %v1680_v27, %v1644_v24  ;;  %v3497_v19 = vmul.f32 %v3166_v39, %v1505_v6  ;;  %v3500_v55 = vmul.f32 %v3169_v40, %v1505_v6 }
 0x11c   : > { %5063 = vst [vmem:[#allocation24_spill] sm:$0xff] %v3461_v3  ;;  %v3472_v18 = vpop.f32.mrb[27].mxu0  ;;  %5067 = vst [vmem:[#allocation27_spill] sm:$0xff] %v3489_v17  ;;  %v1681_v45 = vmul.f32 %v3378_v13, %v1505_v6  ;;  %v1215_v3 = vadd.f32 %v1183_v15, %v1147_v58  ;;  %v1081_v10 = vadd.f32 %v3149_v28, %v1049_v56  ;;  %v1807_v24 = vsel %vm790_vm2, %v3483_v46, 0.0 }
 0x11d   : > { %5064 = vst [vmem:[#allocation25_spill] sm:$0xff] %v3472_v18  ;;  %v3492_v18 = vld [vmem:[#allocation2 + $0xb0] sm:$0xff]  ;;  %v1082_v47 = vadd.f32 %v3149_v28, %v1050_v36  ;;  %v1216_v7 = vadd.f32 %v1184_v44, %v1148_v43  ;;  %v3511_v38 = vadd.f32 %v3257_v52, %v3085_v34  ;;  %v3516_v27 = vmul.f32 %v3169_v40, %v1523_v57 }
 0x11e   : > { %v1283_v6 = vadd.f32 %v3413_v23, %v1215_v3  ;;  %v987_v58 = vrot.slane %v3492_v18, 7  ;;  %v1806_v56 = vsel %vm790_vm2, %v3489_v17, 0.0  ;;  %v1645_v15 = vadd.f32 %v1613_v49, %v1577_v61 }
 0x11f   : > { %v3494_v21 = vpop.f32.mrb[28].mxu0  ;;  %v1744_v36 = vmax.f32 %v1712_v37, 0.0  ;;  %v969_v44 = vrot.slane %v3503_v33, 7  ;;  %v1469_v52 = vrot.slane %v3425_v12, 1  ;;  %v1117_v46 = vmul.f32 %v3172_v42, %v3459_v9 }
 0x120   : > { %5068 = vst [vmem:[#allocation28_spill] sm:$0xff] %v3494_v21  ;;  %v3505_v53 = vpop.f32.mrb[29].mxu0  ;;  %v3531_v23 = vmul.f32 %v3166_v39, %v1523_v57  ;;  %v1118_v49 = vmul.f32 %v3172_v42, %v3453_v5  ;;  %v1284_v61 = vadd.f32 %v3359_v32, %v1216_v7  ;;  %v3541_v17 = vadd.f32 %v3085_v34, %v3267_v29 }
 0x121   : > { %5069 = vst [vmem:[#allocation29_spill] sm:$0xff] %v3505_v53  ;;  %v1546_v53 = vmul.f32 %v3166_v39, %v3391_v48  ;;  %v1351_v21 = vadd.f32 %v1319_v0, %v1283_v6  ;;  %v1008_v48 = vsel %vm1002_vm3, %v969_v44, %v987_v58  ;;  %v5072_v57 = vrot.slane %v3215_v4, 7 }
 0x122   : > { %v3549_v35 = vmin.f32 %v1744_v36, 6.0  ;;  %v3553_v32 = vmul.f32 %v3141_v25, %v3425_v12  ;;  %v1322_v29 = vmul.f32 %v3153_v30, %v3425_v12  ;;  %v1713_v7 = vadd.f32 %v1681_v45, %v1645_v15 }
 0x123   : > { %v3523_v43 = vpop.f32.mrb[30].mxu0  ;;  %v5074_v0 = vrot.slane %v3197_v59, 1  ;;  %v1149_v6 = vadd.f32 %v1117_v46, %v1081_v10  ;;  %v1387_v4 = vmul.f32 %v3183_v51, %v3434_v63  ;;  %v1451_v58 = vrot.slane %v3434_v63, 1 }
 0x124   : > { %5070 = vst [vmem:[#allocation30_spill] sm:$0xff] %v3523_v43  ;;  %v3533_v3 = vpop.f32.mrb[31].mxu0  ;;  %v1808_v43 = vadd.f32 %v1807_v24, %v1806_v56  ;;  %5073 = vst [vmem:[#allocation32_spill] sm:$0xff] %v3549_v35  ;;  %v1150_v56 = vadd.f32 %v1118_v49, %v1082_v47  ;;  %v1352_v36 = vadd.f32 %v1320_v20, %v1284_v61  ;;  %v1809_v15 = vsel %vm790_vm2, %v3549_v35, 0.0 }
 0x125   : > { %5071 = vst [vmem:[#allocation31_spill] sm:$0xff] %v3533_v3  ;;  %v1026_v3 = vsel %vm1002_vm3, %v5072_v57, %v969_v44  ;;  %v1506_v24 = vsel %vm1501_vm4, %v1469_v52, %v5074_v0  ;;  %v1186_v57 = vmul.f32 %v3208_v1, %v1008_v48  ;;  %v1388_v45 = vmul.f32 %v3183_v51, %v3425_v12 }
 0x126   : > { %v1185_v44 = vmul.f32 %v3208_v1, %v1026_v3  ;;  %v1051_v59 = vmul.f32 %v3111_v60, %v3459_v9  ;;  %v1052_v46 = vmul.f32 %v3111_v60, %v3453_v5  ;;  %v1419_v10 = vadd.f32 %v1387_v4, %v1351_v21  ;;  %v3590_v4 = vld [vmem:[#allocation2 + $0xc8] sm:$0xff] }
 0x127   : > { %v1745_v0 = vmax.f32 %v1713_v7, 0.0  ;;  %v1218_v20 = vadd.f32 %v1186_v57, %v1150_v56  ;;  %v3575_v49 = vmul.f32 %v3166_v39, %v1506_v24  ;;  %v1255_v61 = vmul.f32 %v3141_v25, %v3434_v63 }
 0x128   : > { %v1217_v47 = vadd.f32 %v1185_v44, %v1149_v6  ;;  %v1321_v12 = vmul.f32 %v3153_v30, %v3434_v63  ;;  %v3583_v9 = vsel %vm1501_vm4, %v1451_v58, %v1469_v52  ;;  %v3586_v5 = vmul.f32 %v3169_v40, %v1506_v24 }
 0x129   : > { %v1683_v21 = vmul.f32 %v3378_v13, %v1506_v24  ;;  %v1420_v7 = vadd.f32 %v1388_v45, %v1352_v36  ;;  %v1810_v56 = vadd.f32 %v1809_v15, %v1808_v43  ;;  %v1083_v44 = vadd.f32 %v3149_v28, %v1051_v59  ;;  %v3600_v36 = vld [vmem:[#allocation2 + $0xd0] sm:$0xff] }
 0x12a   : > { %v1285_v6 = vadd.f32 %v3468_v16, %v1217_v47  ;;  %v1084_v57 = vadd.f32 %v3149_v28, %v1052_v46  ;;  %v1578_v63 = vadd.f32 %v1546_v53, %v1419_v10  ;;  %v1616_v52 = vmul.f32 %v3169_v40, %v3583_v9 }
 0x12b   : > { %v3596_v58 = vmin.f32 %v1745_v0, 6.0  ;;  %v1470_v37 = vrot.slane %v3492_v18, 1  ;;  %v1286_v24 = vadd.f32 %v3419_v22, %v1218_v20  ;;  %v1682_v16 = vmul.f32 %v3378_v13, %v3583_v9 }
 0x12c   : > { %v3606_v43 = vmul.f32 %v3141_v25, %v3492_v18  ;;  %v1353_v45 = vadd.f32 %v1321_v12, %v1285_v6  ;;  %v970_v53 = vrot.slane %v3590_v4, 7  ;;  %v1579_v59 = vadd.f32 %v3423_v50, %v1420_v7 }
 0x12d   : > { %5075 = vst [vmem:[#allocation33_spill] sm:$0xff] %v3596_v58  ;;  %v3612_v46 = vmul.f32 %v3153_v30, %v3492_v18  ;;  %v1390_v22 = vmul.f32 %v3183_v51, %v3492_v18  ;;  %v1119_v10 = vmul.f32 %v3172_v42, %v1026_v3  ;;  %v1646_v15 = vadd.f32 %v3516_v27, %v1578_v63 }
 0x12e   : > { %v3620_v0 = vmul.f32 %v3141_v25, %v3503_v33  ;;  %v1389_v47 = vmul.f32 %v3183_v51, %v3503_v33  ;;  %v988_v50 = vrot.slane %v3600_v36, 7  ;;  %v1811_v20 = vsel %vm790_vm2, %v3596_v58, 0.0 }
 0x12f   : > { %v5076_v12 = vrot.slane %v3201_v62, 1  ;;  %v1323_v27 = vmul.f32 %v3153_v30, %v3503_v33  ;;  %v1354_v7 = vadd.f32 %v1322_v29, %v1286_v24  ;;  %v1053_v6 = vmul.f32 %v3111_v60, %v1026_v3 }
 0x130   : > { %v1054_v63 = vmul.f32 %v3111_v60, %v1008_v48  ;;  %v1421_v35 = vadd.f32 %v1389_v47, %v1353_v45  ;;  %v5077_v31 = vrot.slane %v3230_v11, 7  ;;  %v1647_v62 = vadd.f32 %v3500_v55, %v1579_v59 }
 0x131   : > { %v1507_v18 = vsel %vm1501_vm4, %v1470_v37, %v5076_v12  ;;  %v3642_v58 = vadd.f32 %v1811_v20, %v1810_v56  ;;  %v1120_v12 = vmul.f32 %v3172_v42, %v1008_v48  ;;  %v1151_v2 = vadd.f32 %v1119_v10, %v1083_v44 }
 0x132   : > { %v3639_v14 = vsel %vm1002_vm3, %v5077_v31, %v970_v53  ;;  %v1714_v54 = vadd.f32 %v1682_v16, %v1646_v15  ;;  %v1452_v29 = vrot.slane %v3503_v33, 1  ;;  %v3648_v3 = vsel %vm1002_vm3, %v970_v53, %v988_v50 }
 0x133   : > { %v1187_v11 = vmul.f32 %v3208_v1, %v3639_v14  ;;  %v3653_v31 = vmul.f32 %v3166_v39, %v1507_v18  ;;  %v3656_v55 = vmul.f32 %v3169_v40, %v1507_v18  ;;  %v1685_v56 = vmul.f32 %v3378_v13, %v1507_v18 }
 0x134   : > { %v1422_v48 = vadd.f32 %v1390_v22, %v1354_v7  ;;  %v3660_v44 = vadd.f32 %v3149_v28, %v1053_v6  ;;  %v3663_v33 = vadd.f32 %v3149_v28, %v1054_v63  ;;  %v1580_v24 = vadd.f32 %v3531_v23, %v1421_v35 }
 0x135   : > { %v1219_v16 = vadd.f32 %v1187_v11, %v1151_v2  ;;  %v1152_v45 = vadd.f32 %v1120_v12, %v1084_v57  ;;  %v1715_v53 = vadd.f32 %v1683_v21, %v1647_v62  ;;  %v1188_v59 = vmul.f32 %v3208_v1, %v3648_v3  ;;  %v5080_v62 = vld [vmem:[#allocation14_spill] sm:$0xff] }
 0x136   : > { %v5078_v10 = vmax.f32 %v3511_v38, 0.0  ;;  %v1746_v47 = vmax.f32 %v1714_v54, 0.0  ;;  %v3672_v22 = vsel %vm1501_vm4, %v1452_v29, %v1470_v37  ;;  %v738_v20 = vmax.f32 %v3541_v17, 0.0  ;;  %v5081_v29 = vld [vmem:[#allocation15_spill] sm:$0xff] }
 0x137   : > { %v1287_v50 = vadd.f32 %v1255_v61, %v1219_v16  ;;  %v1581_v18 = vadd.f32 %v3497_v19, %v1422_v48  ;;  %v3678_v2 = vmul.f32 %v3141_v25, %v3600_v36  ;;  %v3682_v35 = vmul.f32 %v3153_v30, %v3600_v36  ;;  %v5082_v16 = vld [vmem:[#allocation16_spill] sm:$0xff] }
 0x138   : > { %v771_v15 = vmin.f32 %v5078_v10, 6.0  ;;  %v3686_v54 = vmul.f32 %v3183_v51, %v3600_v36  ;;  %v1648_v38 = vadd.f32 %v1616_v52, %v1580_v24  ;;  %v770_v37 = vmin.f32 %v738_v20, 6.0 }
 0x139   : > { %v1355_v23 = vadd.f32 %v1323_v27, %v1287_v50  ;;  %v643_v17 = vadd.f32 %v3293_v8, %v3085_v34  ;;  %v1618_v19 = vmul.f32 %v3169_v40, %v3672_v22  ;;  %v1220_v61 = vadd.f32 %v1188_v59, %v1152_v45 }
 0x13a   : > { %846 = vst.msk [vmem:[#allocation2 + $0xf0] sm:$0xff] %vm790_vm2, %v771_v15  ;;  %v1391_v21 = vmul.f32 %v3183_v51, %v3590_v4  ;;  %v638_v57 = vadd.f32 %v3085_v34, %v3303_v26  ;;  %v3697_v7 = vmin.f32 %v1746_v47, 6.0  ;;  %v1684_v52 = vmul.f32 %v3378_v13, %v3672_v22  ;;  %845 = vst.msk [vmem:[#allocation2 + $0xe8] sm:$0xff] %vm790_vm2, %v770_v37 }
 0x13b   : > { %v1747_v27 = vmax.f32 %v1715_v53, 0.0  ;;  %v741_v6 = vmax.f32 %v643_v17, 0.0  ;;  %v653_v12 = vadd.f32 %v5080_v62, %v3085_v34  ;;  %v648_v11 = vadd.f32 %v3085_v34, %v5081_v29 }
 0x13c   : > { %5079 = vst [vmem:[#allocation34_spill] sm:$0xff] %v3697_v7  ;;  %v1423_v8 = vadd.f32 %v1391_v21, %v1355_v23  ;;  %v740_v63 = vmax.f32 %v638_v57, 0.0  ;;  %v1649_v48 = vadd.f32 %v3586_v5, %v1581_v18  ;;  %v1716_v26 = vadd.f32 %v1684_v52, %v1648_v38 }
 0x13d   : > { %v773_v24 = vmin.f32 %v741_v6, 6.0  ;;  %v663_v45 = vadd.f32 %v5082_v16, %v3085_v34  ;;  %v1288_v53 = vadd.f32 %v3553_v32, %v1220_v61  ;;  %v1550_v59 = vmul.f32 %v3166_v39, %v3583_v9 }
 0x13e   : > { %v772_v10 = vmin.f32 %v740_v63, 6.0  ;;  %v743_v15 = vmax.f32 %v653_v12, 0.0  ;;  %v1471_v47 = vrot.slane %v3600_v36, 1  ;;  %v1453_v50 = vrot.slane %v3590_v4, 1  ;;  %v5084_v12 = vld [vmem:[#allocation5_spill] sm:$0xff] }
 0x13f   : > { %848 = vst.msk [vmem:[#allocation2 + $0x110] sm:$0xff] %vm790_vm2, %v773_v24  ;;  %v742_v5 = vmax.f32 %v648_v11, 0.0  ;;  %v745_v18 = vmax.f32 %v663_v45, 0.0  ;;  %v1813_v38 = vsel %vm790_vm2, %v3697_v7, 0.0  ;;  %v3719_v23 = vmin.f32 %v1747_v27, 6.0 }
 0x140   : > { %v3723_v32 = vmul.f32 %v3141_v25, %v3590_v4  ;;  %v1582_v9 = vadd.f32 %v1550_v59, %v1423_v8  ;;  %847 = vst.msk [vmem:[#allocation2 + $0x108] sm:$0xff] %vm790_vm2, %v772_v10  ;;  %v1748_v36 = vmax.f32 %v1716_v26, 0.0  ;;  %v1717_v37 = vadd.f32 %v1685_v56, %v1649_v48 }
 0x141   : > { %v3714_v20 = vld [vmem:[#allocation2 + $0xf0] sm:$0xff]  ;;  %5083 = vst [vmem:[#allocation14_spill] sm:$0xff] %v3719_v23  ;;  %v775_v61 = vmin.f32 %v743_v15, 6.0  ;;  %v1325_v21 = vmul.f32 %v3153_v30, %v3590_v4  ;;  %v1356_v57 = vadd.f32 %v3612_v46, %v1288_v53  ;;  %v3730_v52 = vld [vmem:[#allocation2 + $0xe8] sm:$0xff]  ;;  %v774_v27 = vmin.f32 %v742_v5, 6.0 }
 0x142   : > { %v989_v17 = vrot.slane %v3714_v20, 7  ;;  %v777_v6 = vmin.f32 %v745_v18, 6.0  ;;  %v1121_v63 = vmul.f32 %v3172_v42, %v3639_v14  ;;  %v1122_v8 = vmul.f32 %v3172_v42, %v3648_v3 }
 0x143   : > { %v1526_v56 = vsel %vm1501_vm4, %v1453_v50, %v1471_v47  ;;  %v971_v62 = vrot.slane %v3730_v52, 7  ;;  %850 = vst.msk [vmem:[#allocation2 + $0x130] sm:$0xff] %vm790_vm2, %v775_v61  ;;  %v1814_v4 = vadd.f32 %v1813_v38, %v3642_v58  ;;  %v1815_v46 = vsel %vm790_vm2, %v3719_v23, 0.0  ;;  %849 = vst.msk [vmem:[#allocation2 + $0x128] sm:$0xff] %vm790_vm2, %v774_v27  ;;  %v5087_v58 = vld [vmem:[#allocation7_spill] sm:$0xff] }
 0x144   : > { %v5085_v29 = vrot.slane %v5084_v12, 1  ;;  %v1650_v48 = vadd.f32 %v1618_v19, %v1582_v9  ;;  %852 = vst.msk [vmem:[#allocation2 + $0x150] sm:$0xff] %vm790_vm2, %v777_v6  ;;  %v3749_v26 = vmin.f32 %v1748_v36, 6.0  ;;  %v1749_v24 = vmax.f32 %v1717_v37, 0.0 }
 0x145   : > { %v1010_v16 = vsel %vm1002_vm3, %v971_v62, %v989_v17  ;;  %v5088_v45 = vrot.slane %v5087_v58, 7  ;;  %v1055_v59 = vmul.f32 %v3111_v60, %v3639_v14  ;;  %v1056_v19 = vmul.f32 %v3111_v60, %v3648_v3 }
 0x146   : > { %v1508_v11 = vsel %vm1501_vm4, %v1471_v47, %v5085_v29  ;;  %5086 = vst [vmem:[#allocation15_spill] sm:$0xff] %v3749_v26  ;;  %v1424_v10 = vadd.f32 %v3686_v54, %v1356_v57  ;;  %v1686_v15 = vmul.f32 %v3378_v13, %v1526_v56  ;;  %v1153_v47 = vadd.f32 %v1121_v63, %v3660_v44  ;;  %v3773_v36 = vld [vmem:[#allocation2 + $0x110] sm:$0xff] }
 0x147   : > { %v1028_v53 = vsel %vm1002_vm3, %v5088_v45, %v971_v62  ;;  %v1154_v50 = vadd.f32 %v1122_v8, %v3663_v33  ;;  %v1190_v18 = vmul.f32 %v3208_v1, %v1010_v16  ;;  %v1816_v38 = vadd.f32 %v1815_v46, %v1814_v4  ;;  %v3779_v17 = vld [vmem:[#allocation2 + $0x108] sm:$0xff]  ;;  %v5090_v45 = vld [vmem:[#allocation17_spill] sm:$0xff] }
 0x148   : > { %v1189_v5 = vmul.f32 %v3208_v1, %v1028_v53  ;;  %v3768_v9 = vmul.f32 %v3166_v39, %v1508_v11  ;;  %v3771_v14 = vmul.f32 %v3169_v40, %v1508_v11  ;;  %v1718_v3 = vadd.f32 %v1686_v15, %v1650_v48 }
 0x149   : > { %v1817_v54 = vsel %vm790_vm2, %v3749_v26, 0.0  ;;  %v3777_v44 = vmin.f32 %v1749_v24, 6.0  ;;  %v1222_v37 = vadd.f32 %v1190_v18, %v1154_v50  ;;  %v1687_v61 = vmul.f32 %v3378_v13, %v1508_v11 }
 0x14a   : > { %v1221_v33 = vadd.f32 %v1189_v5, %v1153_v47  ;;  %v1087_v57 = vadd.f32 %v3149_v28, %v1055_v59  ;;  %v1088_v27 = vadd.f32 %v3149_v28, %v1056_v19  ;;  %v1583_v6 = vadd.f32 %v3575_v49, %v1424_v10 }
 0x14b   : > { %5089 = vst [vmem:[#allocation16_spill] sm:$0xff] %v3777_v44  ;;  %v1290_v8 = vadd.f32 %v3606_v43, %v1222_v37  ;;  %v1552_v62 = vmul.f32 %v3166_v39, %v3672_v22  ;;  %v990_v4 = vrot.slane %v3773_v36, 7  ;;  %v1818_v46 = vadd.f32 %v1817_v54, %v1816_v38 }
 0x14c   : > { %v1289_v63 = vadd.f32 %v3620_v0, %v1221_v33  ;;  %v1620_v12 = vmul.f32 %v3169_v40, %v1526_v56  ;;  %v1750_v29 = vmax.f32 %v1718_v3, 0.0  ;;  %v972_v11 = vrot.slane %v3779_v17, 7 }
 0x14d   : > { %v1819_v48 = vsel %vm790_vm2, %v3777_v44, 0.0  ;;  %v1358_v49 = vadd.f32 %v3682_v35, %v1290_v8  ;;  %v3796_v0 = vmul.f32 %v3166_v39, %v1526_v56  ;;  %v1651_v43 = vadd.f32 %v3656_v55, %v1583_v6  ;;  %v5091_v56 = vld [vmem:[#allocation9_spill] sm:$0xff]  ;;  %v4126_v44 = vld [vmem:[#allocation2 + $0x1a0] sm:$0xff] }
 0x14e   : > { %v1357_v24 = vadd.f32 %v1325_v21, %v1289_v63  ;;  %v1123_v22 = vmul.f32 %v3172_v42, %v1028_v53  ;;  %v1393_v58 = vmul.f32 %v3183_v51, %v3730_v52  ;;  %v3804_v59 = vadd.f32 %v3085_v34, %v5090_v45  ;;  %v5094_v63 = vld [vmem:[#allocation6_spill] sm:$0xff] }
 0x14f   : > { %v1394_v19 = vmul.f32 %v3183_v51, %v3714_v20  ;;  %v1472_v21 = vrot.slane %v3714_v20, 1  ;;  %v3811_v35 = vsel %vm1002_vm3, %v972_v11, %v990_v4  ;;  %v5092_v55 = vrot.slane %v5091_v56, 7 }
 0x150   : > { %v3819_v15 = vmin.f32 %v1750_v29, 6.0  ;;  %v1820_v47 = vadd.f32 %v1819_v48, %v1818_v46  ;;  %v1124_v34 = vmul.f32 %v3172_v42, %v1010_v16  ;;  %v1425_v50 = vadd.f32 %v1393_v58, %v1357_v24 }
 0x151   : > { %v3817_v10 = vsel %vm1002_vm3, %v5092_v55, %v972_v11  ;;  %v3824_v5 = vmul.f32 %v3141_v25, %v3714_v20  ;;  %v1328_v18 = vmul.f32 %v3153_v30, %v3714_v20  ;;  %v1426_v38 = vadd.f32 %v1394_v19, %v1358_v49  ;;  %v3862_v19 = vld [vmem:[#allocation2 + $0x130] sm:$0xff] }
 0x152   : > { %5093 = vst [vmem:[#allocation5_spill] sm:$0xff] %v3819_v15  ;;  %v1454_v3 = vrot.slane %v3730_v52, 1  ;;  %v1155_v54 = vadd.f32 %v1123_v22, %v1087_v57  ;;  %v1719_v33 = vadd.f32 %v1687_v61, %v1651_v43  ;;  %v1191_v37 = vmul.f32 %v3208_v1, %v3817_v10 }
 0x153   : > { %v1192_v6 = vmul.f32 %v3208_v1, %v3811_v35  ;;  %v5095_v8 = vrot.slane %v5094_v63, 1  ;;  %v1057_v46 = vmul.f32 %v3111_v60, %v1028_v53  ;;  %v1058_v20 = vmul.f32 %v3111_v60, %v1010_v16  ;;  %v3852_v16 = vld [vmem:[%s4983_s2] ss:$0 sm:$0xff]  ;;  %v5096_v53 = vld [vmem:[#allocation18_spill] sm:$0xff] }
 0x154   : > { %v744_v29 = vmax.f32 %v3804_v59, 0.0  ;;  %v1821_v61 = vsel %vm790_vm2, %v3819_v15, 0.0  ;;  %v1156_v57 = vadd.f32 %v1124_v34, %v1088_v27  ;;  %v1584_v11 = vadd.f32 %v1552_v62, %v1425_v50 }
 0x155   : > { %v1509_v4 = vsel %vm1501_vm4, %v1472_v21, %v5095_v8  ;;  %v1223_v48 = vadd.f32 %v1191_v37, %v1155_v54  ;;  %v1261_v24 = vmul.f32 %v3141_v25, %v3730_v52  ;;  %v3846_v49 = vsel %vm1501_vm4, %v1454_v3, %v1472_v21  ;;  %v3864_v21 = vld [vmem:[#allocation2 + $0x128] sm:$0xff] }
 0x156   : > { %v1585_v43 = vadd.f32 %v3653_v31, %v1426_v38  ;;  %v3856_v22 = vadd.f32 %v3852_v16, %v5096_v53  ;;  %v3859_v27 = vmul.f32 %v3166_v39, %v1509_v4  ;;  %v1751_v62 = vmax.f32 %v1719_v33, 0.0 }
 0x157   : > { %v1224_v58 = vadd.f32 %v1192_v6, %v1156_v57  ;;  %v1291_v45 = vadd.f32 %v3723_v32, %v1223_v48  ;;  %v1822_v31 = vadd.f32 %v1821_v61, %v1820_v47  ;;  %v3867_v56 = vmul.f32 %v3169_v40, %v1509_v4 }
 0x158   : > { %v1689_v55 = vmul.f32 %v3378_v13, %v1509_v4  ;;  %v1327_v34 = vmul.f32 %v3153_v30, %v3730_v52  ;;  %v1089_v50 = vadd.f32 %v3149_v28, %v1057_v46  ;;  %v1090_v38 = vadd.f32 %v3149_v28, %v1058_v20 }
 0x159   : > { %v1622_v32 = vmul.f32 %v3169_v40, %v3846_v49  ;;  %v1652_v3 = vadd.f32 %v1620_v12, %v1584_v11  ;;  %v1653_v54 = vadd.f32 %v3771_v14, %v1585_v43  ;;  %v991_v47 = vrot.slane %v3862_v19, 7  ;;  %v5098_v43 = vld [vmem:[#allocation11_spill] sm:$0xff] }
 0x15a   : > { %v1359_v33 = vadd.f32 %v1327_v34, %v1291_v45  ;;  %v973_v37 = vrot.slane %v3864_v21, 7  ;;  %v1688_v6 = vmul.f32 %v3378_v13, %v3846_v49  ;;  %v3881_v63 = vmin.f32 %v1751_v62, 6.0 }
 0x15b   : > { %v1473_v52 = vrot.slane %v3773_v36, 1  ;;  %v1292_v28 = vadd.f32 %v3678_v2, %v1224_v58  ;;  %v3887_v8 = vmul.f32 %v3141_v25, %v3773_v36  ;;  %v3891_v14 = vmul.f32 %v3153_v30, %v3773_v36  ;;  %v5100_v58 = vld [vmem:[#allocation8_spill] sm:$0xff] }
 0x15c   : > { %5097 = vst [vmem:[#allocation7_spill] sm:$0xff] %v3881_v63  ;;  %v1125_v12 = vmul.f32 %v3172_v42, %v3817_v10  ;;  %v1395_v4 = vmul.f32 %v3183_v51, %v3779_v17  ;;  %v1720_v46 = vadd.f32 %v1688_v6, %v1652_v3  ;;  %v1396_v20 = vmul.f32 %v3183_v51, %v3773_v36 }
 0x15d   : > { %v1126_v2 = vmul.f32 %v3172_v42, %v3811_v35  ;;  %v3903_v61 = vmul.f32 %v3141_v25, %v3779_v17  ;;  %v1721_v11 = vadd.f32 %v1689_v55, %v1653_v54  ;;  %v3907_v48 = vsel %vm1002_vm3, %v973_v37, %v991_v47 }
 0x15e   : > { %v1427_v57 = vadd.f32 %v1395_v4, %v1359_v33  ;;  %v5099_v53 = vrot.slane %v5098_v43, 7  ;;  %v1823_v36 = vsel %vm790_vm2, %v3881_v63, 0.0  ;;  %v5101_v45 = vrot.slane %v5100_v58, 1 }
 0x15f   : > { %v1329_v55 = vmul.f32 %v3153_v30, %v3779_v17  ;;  %v1360_v3 = vadd.f32 %v1328_v18, %v1292_v28  ;;  %v1824_v54 = vadd.f32 %v1823_v36, %v1822_v31  ;;  %v1157_v33 = vadd.f32 %v1125_v12, %v1089_v50 }
 0x160   : > { %v3913_v62 = vsel %vm1002_vm3, %v5099_v53, %v973_v37  ;;  %v1510_v34 = vsel %vm1501_vm4, %v1473_v52, %v5101_v45  ;;  %v1455_v47 = vrot.slane %v3779_v17, 1  ;;  %v1752_v6 = vmax.f32 %v1720_v46, 0.0 }
 0x161   : > { %v1193_v37 = vmul.f32 %v3208_v1, %v3913_v62  ;;  %v1059_v4 = vmul.f32 %v3111_v60, %v3817_v10  ;;  %v1060_v43 = vmul.f32 %v3111_v60, %v3811_v35  ;;  %v1194_v53 = vmul.f32 %v3208_v1, %v3907_v48 }
 0x162   : > { %v1158_v58 = vadd.f32 %v1126_v2, %v1090_v38  ;;  %v1586_v18 = vadd.f32 %v3796_v0, %v1427_v57  ;;  %v1753_v31 = vmax.f32 %v1721_v11, 0.0  ;;  %v3934_v17 = vmul.f32 %v3166_v39, %v1510_v34  ;;  %v3950_v57 = vld [vmem:[%s4985_s4] ss:$0 sm:$0xff] }
 0x163   : > { %v1225_v50 = vadd.f32 %v1193_v37, %v1157_v33  ;;  %v3937_v28 = vmul.f32 %v3169_v40, %v1510_v34  ;;  %v1691_v12 = vmul.f32 %v3378_v13, %v1510_v34  ;;  %v1428_v10 = vadd.f32 %v1396_v20, %v1360_v3 }
 0x164   : > { %v3942_v35 = vsel %vm1501_vm4, %v1455_v47, %v1473_v52  ;;  %v1474_v46 = vrot.slane %v3862_v19, 1  ;;  %v1226_v38 = vadd.f32 %v1194_v53, %v1158_v58  ;;  %v3945_v0 = vmin.f32 %v1752_v6, 6.0  ;;  %v5104_v6 = vld [vmem:[#allocation10_spill] sm:$0xff] }
 0x165   : > { %v1293_v2 = vadd.f32 %v1261_v24, %v1225_v50  ;;  %v3953_v11 = vadd.f32 %v3950_v57, %v1059_v4  ;;  %v3956_v20 = vadd.f32 %v3950_v57, %v1060_v43  ;;  %v3960_v52 = vmul.f32 %v3141_v25, %v3862_v19 }
 0x166   : > { %5102 = vst [vmem:[#allocation17_spill] sm:$0xff] %v3945_v0  ;;  %v1654_v36 = vadd.f32 %v1622_v32, %v1586_v18  ;;  %v3962_v45 = vmin.f32 %v1753_v31, 6.0  ;;  %v1397_v34 = vmul.f32 %v3183_v51, %v3864_v21  ;;  %v1587_v3 = vadd.f32 %v3768_v9, %v1428_v10 }
 0x167   : > { %v1361_v24 = vadd.f32 %v1329_v55, %v1293_v2  ;;  %v1624_v33 = vmul.f32 %v3169_v40, %v3942_v35  ;;  %v3971_v47 = vmul.f32 %v3153_v30, %v3862_v19  ;;  %v776_v37 = vmin.f32 %v744_v29, 6.0  ;;  %v5107_v2 = vld [vmem:[#allocation19_spill] sm:$0xff] }
 0x168   : > { %5103 = vst [vmem:[#allocation9_spill] sm:$0xff] %v3962_v45  ;;  %v1690_v32 = vmul.f32 %v3378_v13, %v3942_v35  ;;  %v5105_v55 = vrot.slane %v5104_v6, 1  ;;  %v1294_v9 = vadd.f32 %v3824_v5, %v1226_v38  ;;  %v1825_v53 = vsel %vm790_vm2, %v3945_v0, 0.0 }
 0x169   : > { %v1429_v43 = vadd.f32 %v1397_v34, %v1361_v24  ;;  %v1398_v58 = vmul.f32 %v3183_v51, %v3862_v19  ;;  %v3988_v59 = vmul.f32 %v3141_v25, %v3864_v21  ;;  %v3992_v29 = vmul.f32 %v3153_v30, %v3864_v21  ;;  %851 = vst.msk [vmem:[#allocation2 + $0x148] sm:$0xff] %vm790_vm2, %v776_v37 }
 0x16a   : > { %v1511_v4 = vsel %vm1501_vm4, %v1474_v46, %v5105_v55  ;;  %v1722_v18 = vadd.f32 %v1690_v32, %v1654_v36  ;;  %v1827_v5 = vsel %vm790_vm2, %v3962_v45, 0.0  ;;  %v1556_v31 = vmul.f32 %v3166_v39, %v3846_v49  ;;  %v5108_v32 = vld [vmem:[#allocation20_spill] sm:$0xff] }
 0x16b   : > { %v747_v50 = vmax.f32 %v3856_v22, 0.0  ;;  %v1655_v19 = vadd.f32 %v3867_v56, %v1587_v3  ;;  %v4002_v10 = vmul.f32 %v3166_v39, %v1511_v4  ;;  %v1456_v38 = vrot.slane %v3864_v21, 1  ;;  %v5110_v3 = vld [vmem:[#allocation21_spill] sm:$0xff] }
 0x16c   : > { %v668_v24 = vadd.f32 %v3852_v16, %v5107_v2  ;;  %v1362_v36 = vadd.f32 %v3891_v14, %v1294_v9  ;;  %v1588_v34 = vadd.f32 %v1556_v31, %v1429_v43  ;;  %v683_v6 = vadd.f32 %v3852_v16, %v5108_v32  ;;  %v5111_v9 = vld [vmem:[#allocation22_spill] sm:$0xff]  ;;  %v4024_v31 = vld [vmem:[#allocation2 + $0x150] sm:$0xff] }
 0x16d   : > { %5106 = vst [vmem:[#allocation6_spill] sm:$0xff] %v4002_v10  ;;  %v779_v37 = vmin.f32 %v747_v50, 6.0  ;;  %v1826_v49 = vadd.f32 %v1825_v53, %v1824_v54  ;;  %v4011_v22 = vmul.f32 %v3169_v40, %v1511_v4  ;;  %v678_v55 = vadd.f32 %v3852_v16, %v5110_v3 }
 0x16e   : > { %v746_v56 = vmax.f32 %v668_v24, 0.0  ;;  %v1754_v45 = vmax.f32 %v1722_v18, 0.0  ;;  %v1061_v21 = vmul.f32 %v3111_v60, %v3913_v62  ;;  %v749_v14 = vmax.f32 %v683_v6, 0.0 }
 0x16f   : > { %5109 = vst [vmem:[#allocation18_spill] sm:$0xff] %v4011_v22  ;;  %854 = vst.msk [vmem:[#allocation2 + $0x170] sm:$0xff] %vm790_vm2, %v779_v37  ;;  %v693_v43 = vadd.f32 %v3852_v16, %v5111_v9  ;;  %v4022_v54 = vsel %vm1501_vm4, %v1456_v38, %v1474_v46  ;;  %v1723_v53 = vadd.f32 %v1691_v12, %v1655_v19  ;;  %v748_v2 = vmax.f32 %v678_v55, 0.0 }
 0x170   : > { %v778_v50 = vmin.f32 %v746_v56, 6.0  ;;  %v1430_v24 = vadd.f32 %v1398_v58, %v1362_v36  ;;  %v1656_v18 = vadd.f32 %v1624_v33, %v1588_v34  ;;  %v4026_v32 = vld [vmem:[#allocation2 + $0x148] sm:$0xff]  ;;  %v781_v3 = vmin.f32 %v749_v14, 6.0  ;;  %v5113_v34 = vld [vmem:[#allocation13_spill] sm:$0xff] }
 0x171   : > { %v751_v0 = vmax.f32 %v693_v43, 0.0  ;;  %v1062_v37 = vmul.f32 %v3111_v60, %v3907_v48  ;;  %v1127_v6 = vmul.f32 %v3172_v42, %v3913_v62  ;;  %v1128_v46 = vmul.f32 %v3172_v42, %v3907_v48 }
 0x172   : > { %v974_v12 = vrot.slane %v4026_v32, 7  ;;  %853 = vst.msk [vmem:[#allocation2 + $0x168] sm:$0xff] %vm790_vm2, %v778_v50  ;;  %v4036_v19 = vmin.f32 %v1754_v45, 6.0  ;;  %v1692_v33 = vmul.f32 %v3378_v13, %v4022_v54  ;;  %v992_v58 = vrot.slane %v4024_v31, 7  ;;  %856 = vst.msk [vmem:[#allocation2 + $0x190] sm:$0xff] %vm790_vm2, %v781_v3 }
 0x173   : > { %v780_v38 = vmin.f32 %v748_v2, 6.0  ;;  %v1755_v36 = vmax.f32 %v1723_v53, 0.0  ;;  %v5010_v62 = vrot.slane %v4024_v31, 1  ;;  %v5114_v56 = vrot.slane %v5113_v34, 7  ;;  %v909_v34 = vld [vmem:[#allocation2 + $0x160] sm:$0xff] }
 0x174   : > { %5112 = vst [vmem:[#allocation11_spill] sm:$0xff] %v4036_v19  ;;  %v783_v55 = vmin.f32 %v751_v0, 6.0  ;;  %v1828_v14 = vadd.f32 %v1827_v5, %v1826_v49  ;;  %v1693_v45 = vmul.f32 %v3378_v13, %v1511_v4  ;;  %v1589_v9 = vadd.f32 %v3859_v27, %v1430_v24 }
 0x175   : > { %v1031_v48 = vsel %vm1002_vm3, %v5114_v56, %v974_v12  ;;  %v1724_v43 = vadd.f32 %v1692_v33, %v1656_v18  ;;  %855 = vst.msk [vmem:[#allocation2 + $0x188] sm:$0xff] %vm790_vm2, %v780_v38  ;;  %v1093_v50 = vadd.f32 %v3950_v57, %v1061_v21  ;;  %v4052_v53 = vadd.f32 %v3950_v57, %v1062_v37  ;;  %v5116_v21 = vld [vmem:[#allocation12_spill] sm:$0xff] }
 0x176   : > { %v1159_v2 = vadd.f32 %v1127_v6, %v3953_v11  ;;  %v1195_v3 = vmul.f32 %v3208_v1, %v1031_v48  ;;  %858 = vst.msk [vmem:[#allocation2 + $0x1b0] sm:$0xff] %vm790_vm2, %v783_v55  ;;  %v1829_v0 = vsel %vm790_vm2, %v4036_v19, 0.0  ;;  %v1160_v27 = vadd.f32 %v1128_v46, %v3956_v20 }
 0x177   : > { %v4062_v4 = vmul.f32 %v3169_v40, %v4022_v54  ;;  %v1013_v5 = vsel %vm1002_vm3, %v974_v12, %v992_v58  ;;  %v4066_v49 = vmin.f32 %v1755_v36, 6.0  ;;  %v4070_v11 = vmul.f32 %v3141_v25, %v4024_v31 }
 0x178   : > { %v5117_v24 = vrot.slane %v5116_v21, 1  ;;  %v1227_v18 = vadd.f32 %v1195_v3, %v1159_v2  ;;  %v1657_v37 = vadd.f32 %v3937_v28, %v1589_v9  ;;  %v1756_v6 = vmax.f32 %v1724_v43, 0.0  ;;  %v4099_v43 = vld [vmem:[#allocation2 + $0x178] sm:$0xff] }
 0x179   : > { %5115 = vst [vmem:[#allocation8_spill] sm:$0xff] %v4066_v49  ;;  %v4081_v46 = vmul.f32 %v3153_v30, %v4024_v31  ;;  %v4083_v12 = vld [vmem:[#allocation2 + $0x168] sm:$0xff]  ;;  %v957_v33 = vrot.slane %v909_v34, 7  ;;  %v1830_v58 = vadd.f32 %v1829_v0, %v1828_v14  ;;  %v4087_v38 = vmul.f32 %v3183_v51, %v4024_v31  ;;  %v4109_v0 = vld [vmem:[#allocation2 + $0x170] sm:$0xff]  ;;  %v4111_v21 = vld [vmem:[#allocation2 + $0x198] sm:$0xff] }
 0x17a   : > { %v1512_v20 = vsel %vm1501_vm4, %v5010_v62, %v5117_v24  ;;  %v1196_v36 = vmul.f32 %v3208_v1, %v1013_v5  ;;  %v1295_v56 = vadd.f32 %v3903_v61, %v1227_v18  ;;  %v1558_v9 = vmul.f32 %v3166_v39, %v3942_v35  ;;  %v913_v24 = vld [vmem:[#allocation2 + $0x180] sm:$0xff]  ;;  %v4202_v26 = vld [vmem:[#allocation2 + $0x190] sm:$0xff] }
 0x17b   : > { %v4092_v55 = vmul.f32 %v3166_v39, %v1512_v20  ;;  %v4095_v28 = vmul.f32 %v3169_v40, %v1512_v20  ;;  %v975_v14 = vrot.slane %v4083_v12, 7  ;;  %v1831_v2 = vsel %vm790_vm2, %v4066_v49, 0.0 }
 0x17c   : > { %v4105_v3 = vmul.f32 %v3378_v13, %v1512_v20  ;;  %v1129_v61 = vmul.f32 %v3172_v42, %v1031_v48  ;;  %v1363_v34 = vadd.f32 %v3992_v29, %v1295_v56  ;;  %v4113_v35 = vmin.f32 %v1756_v6, 6.0 }
 0x17d   : > { %5118 = vst [vmem:[#allocation10_spill] sm:$0xff] %v4092_v55  ;;  %5119 = vst [vmem:[#allocation19_spill] sm:$0xff] %v4095_v28  ;;  %v1399_v18 = vmul.f32 %v3183_v51, %v4026_v32  ;;  %v1725_v62 = vadd.f32 %v1693_v45, %v1657_v37  ;;  %v1032_v49 = vsel %vm1002_vm3, %v957_v33, %v975_v14  ;;  %v1494_v19 = vrot.slane %v4099_v43, 1 }
 0x17e   : > { %5120 = vst [vmem:[#allocation20_spill] sm:$0xff] %v4105_v3  ;;  %5121 = vst [vmem:[#allocation21_spill] sm:$0xff] %v4113_v35  ;;  %v1832_v13 = vadd.f32 %v1831_v2, %v1830_v58  ;;  %v1228_v20 = vadd.f32 %v1196_v36, %v1160_v27  ;;  %v4122_v29 = vmul.f32 %v3166_v39, %v4022_v54  ;;  %v993_v63 = vrot.slane %v4109_v0, 7  ;;  %v5122_v27 = vld [vmem:[#allocation23_spill] sm:$0xff] }
 0x17f   : > { %v1431_v56 = vadd.f32 %v1399_v18, %v1363_v34  ;;  %v958_v15 = vrot.slane %v913_v24, 7  ;;  %v1161_v45 = vadd.f32 %v1129_v61, %v1093_v50  ;;  %v1457_v37 = vrot.slane %v4026_v32, 1 }
 0x180   : > { %v1197_v33 = vmul.f32 %v3208_v1, %v1032_v49  ;;  %v4132_v58 = vadd.f32 %v3852_v16, %v5122_v27  ;;  %v1833_v54 = vsel %vm790_vm2, %v4113_v35, 0.0  ;;  %v1063_v36 = vmul.f32 %v3111_v60, %v1031_v48  ;;  %v4147_v35 = vld [vmem:[#allocation2 + $0x188] sm:$0xff] }
 0x181   : > { %v1064_v43 = vmul.f32 %v3111_v60, %v1013_v5  ;;  %v1757_v2 = vmax.f32 %v1725_v62, 0.0  ;;  %v1130_v34 = vmul.f32 %v3172_v42, %v1013_v5  ;;  %v1296_v50 = vadd.f32 %v3887_v8, %v1228_v20 }
 0x182   : > { %v1229_v61 = vadd.f32 %v1197_v33, %v1161_v45  ;;  %v1267_v18 = vmul.f32 %v3141_v25, %v4026_v32  ;;  %v1333_v27 = vmul.f32 %v3153_v30, %v4026_v32  ;;  %v1590_v6 = vadd.f32 %v1558_v9, %v1431_v56 }
 0x183   : > { %v1014_v48 = vsel %vm1002_vm3, %v975_v14, %v993_v63  ;;  %v1834_v62 = vadd.f32 %v1833_v54, %v1832_v13  ;;  %v5123_v5 = vrot.slane %v4024_v31, 1  ;;  %v750_v45 = vmax.f32 %v4132_v58, 0.0 }
 0x184   : > { %v1297_v20 = vadd.f32 %v3988_v59, %v1229_v61  ;;  %v1095_v33 = vadd.f32 %v3950_v57, %v1063_v36  ;;  %v1096_v32 = vadd.f32 %v3950_v57, %v1064_v43  ;;  %v4159_v9 = vmin.f32 %v1757_v2, 6.0  ;;  %v4173_v36 = vld [vmem:[%s4984_s3 + $0x8] ss:$0 sm:$0xff] }
 0x185   : > { %v4153_v8 = vsel %vm1501_vm4, %v1457_v37, %v5123_v5  ;;  %v1476_v63 = vrot.slane %v4109_v0, 1  ;;  %v1162_v14 = vadd.f32 %v1130_v34, %v4052_v53  ;;  %v1364_v31 = vadd.f32 %v3971_v47, %v1296_v50  ;;  %5125 = vst [vmem:[#allocation13_spill] sm:$0xff] %v4173_v36 }
 0x186   : > { %5124 = vst [vmem:[#allocation22_spill] sm:$0xff] %v4159_v9  ;;  %v1198_v13 = vmul.f32 %v3208_v1, %v1014_v48  ;;  %v976_v56 = vrot.slane %v4147_v35, 7  ;;  %v1628_v59 = vmul.f32 %v3169_v40, %v4153_v8  ;;  %v1658_v37 = vadd.f32 %v4062_v4, %v1590_v6 }
 0x187   : > { %v1131_v58 = vmul.f32 %v3172_v42, %v1032_v49  ;;  %v1365_v54 = vadd.f32 %v1333_v27, %v1297_v20  ;;  %v1694_v47 = vmul.f32 %v4173_v36, %v4153_v8  ;;  %v4179_v53 = vmul.f32 %v3141_v25, %v4109_v0 }
 0x188   : > { %v4183_v43 = vmul.f32 %v3153_v30, %v4109_v0  ;;  %v4187_v4 = vmul.f32 %v3183_v51, %v4109_v0  ;;  %v1835_v6 = vsel %vm790_vm2, %v4159_v9, 0.0  ;;  %v1513_v2 = vsel %vm1501_vm4, %v1476_v63, %v1494_v19 }
 0x189   : > { %v1401_v34 = vmul.f32 %v3183_v51, %v4083_v12  ;;  %v4197_v50 = vsel %vm1002_vm3, %v958_v15, %v976_v56  ;;  %v1432_v61 = vadd.f32 %v4087_v38, %v1364_v31  ;;  %v1065_v27 = vmul.f32 %v3111_v60, %v1032_v49 }
 0x18a   : > { %v1230_v5 = vadd.f32 %v1198_v13, %v1162_v14  ;;  %v1458_v0 = vrot.slane %v4083_v12, 1  ;;  %v1726_v20 = vadd.f32 %v1694_v47, %v1658_v37  ;;  %v1163_v24 = vadd.f32 %v1131_v58, %v1095_v33 }
 0x18b   : > { %v1433_v9 = vadd.f32 %v1401_v34, %v1365_v54  ;;  %v1199_v19 = vmul.f32 %v3208_v1, %v4197_v50  ;;  %v4206_v23 = vadd.f32 %v1835_v6, %v1834_v62  ;;  %v1066_v15 = vmul.f32 %v3111_v60, %v1014_v48 }
 0x18c   : > { %v1132_v7 = vmul.f32 %v3172_v42, %v1014_v48  ;;  %v4212_v49 = vmul.f32 %v3141_v25, %v4083_v12  ;;  %v4215_v38 = vmul.f32 %v3166_v39, %v1513_v2  ;;  %v4218_v33 = vmul.f32 %v3169_v40, %v1513_v2 }
 0x18d   : > { %v1335_v14 = vmul.f32 %v3153_v30, %v4083_v12  ;;  %v1231_v31 = vadd.f32 %v1199_v19, %v1163_v24  ;;  %v4223_v62 = vmul.f32 %v4173_v36, %v1513_v2  ;;  %v1298_v13 = vadd.f32 %v3960_v52, %v1230_v5  ;;  %v1877_v5 = vld [vmem:[%s4986_s5] sm:$0xff] }
 0x18e   : > { %5126 = vst [vmem:[#allocation12_spill] sm:$0xff] %v4215_v38  ;;  %5127 = vst [vmem:[#allocation23_spill] sm:$0xff] %v4218_v33  ;;  %v4228_v48 = vsel %vm1501_vm4, %v1458_v0, %v1476_v63  ;;  %v994_v37 = vrot.slane %v4202_v26, 7  ;;  %v4232_v58 = vadd.f32 %v3934_v17, %v1432_v61  ;;  %v1758_v54 = vmax.f32 %v1726_v20, 0.0  ;;  %v5130_v61 = vld [vmem:[#allocation24_spill] sm:$0xff] }
 0x18f   : > { %5128 = vst [vmem:[#allocation35_spill] sm:$0xff] %v4223_v62  ;;  %v4235_v47 = vadd.f32 %v3950_v57, %v1065_v27  ;;  %v1592_v12 = vadd.f32 %v4122_v29, %v1433_v9  ;;  %v4239_v24 = vadd.f32 %v3950_v57, %v1066_v15  ;;  %v1164_v6 = vadd.f32 %v1132_v7, %v1096_v32  ;;  %v5131_v32 = vld [vmem:[#allocation25_spill] sm:$0xff]  ;;  %v5133_v20 = vld [vmem:[#allocation28_spill] sm:$0xff] }
 0x190   : > { %5129 = vst [vmem:[#allocation36_spill] sm:$0xff] %v4232_v58  ;;  %v4243_v52 = vmul.f32 %v3141_v25, %v4202_v26  ;;  %v1299_v63 = vadd.f32 %v1267_v18, %v1231_v31  ;;  %v1696_v2 = vmul.f32 %v4173_v36, %v4228_v48  ;;  %v782_v34 = vmin.f32 %v750_v45, 6.0  ;;  %v1878_v45 = vld [vmem:[%s4986_s5 + $0x8] sm:$0xff] }
 0x191   : > { %v703_v27 = vadd.f32 %v3852_v16, %v5130_v61  ;;  %v1366_v29 = vadd.f32 %v4081_v46, %v1298_v13  ;;  %v1015_v9 = vsel %vm1002_vm3, %v976_v56, %v994_v37  ;;  %v1403_v7 = vmul.f32 %v3183_v51, %v4147_v35  ;;  %v5134_v13 = vld [vmem:[#allocation29_spill] sm:$0xff] }
 0x192   : > { %v698_v18 = vadd.f32 %v3852_v16, %v5131_v32  ;;  %v4263_v0 = vmin.f32 %v1758_v54, 6.0  ;;  %v1660_v46 = vadd.f32 %v1628_v59, %v1592_v12  ;;  %857 = vst.msk [vmem:[#allocation2 + $0x1a8] sm:$0xff] %vm790_vm2, %v782_v34  ;;  %v713_v19 = vadd.f32 %v3852_v16, %v5133_v20  ;;  %v5135_v12 = vld [vmem:[#allocation30_spill] sm:$0xff] }
 0x193   : > { %v753_v56 = vmax.f32 %v703_v27, 0.0  ;;  %v1367_v15 = vadd.f32 %v1335_v14, %v1299_v63  ;;  %v708_v37 = vadd.f32 %v3852_v16, %v5134_v13  ;;  %v1200_v61 = vmul.f32 %v3208_v1, %v1015_v9  ;;  %v5136_v27 = vld [vmem:[#allocation31_spill] sm:$0xff] }
 0x194   : > { %5132 = vst [vmem:[#allocation24_spill] sm:$0xff] %v4263_v0  ;;  %v752_v31 = vmax.f32 %v698_v18, 0.0  ;;  %v755_v17 = vmax.f32 %v713_v19, 0.0  ;;  %v2859_v62 = vmov 0.0|0.0   ;;  %v2798_v54 = vpack.c.bf16 %v1878_v45, %v1877_v5 }
 0x195   : > { %v785_v32 = vmin.f32 %v753_v56, 6.0  ;;  %2797 = vmatprep.subr.bf16.mxu0 %v2859_v62  ;;  %v754_v59 = vmax.f32 %v708_v37, 0.0  ;;  %v723_v34 = vadd.f32 %v3852_v16, %v5135_v12  ;;  %v718_v20 = vadd.f32 %v3852_v16, %v5136_v27 }
 0x196   : > { %v784_v33 = vmin.f32 %v752_v31, 6.0  ;;  %v5137_v14 = vrot.slane %v4111_v21, 1  ;;  %v5138_v63 = vrot.slane %v4202_v26, 1  ;;  %v1068_v56 = vmul.f32 %v3111_v60, %v1015_v9  ;;  %2799 = vmatpush3.bf16.msra.mxu0 %v2798_v54  ;;  %v1879_v21 = vld [vmem:[%s4986_s5 + $0x10] sm:$0xff] }
 0x197   : > { %860 = vst.msk [vmem:[#allocation2 + $0x1d0] sm:$0xff] %vm790_vm2, %v785_v32  ;;  %v787_v62 = vmin.f32 %v755_v17, 6.0  ;;  %v1435_v5 = vadd.f32 %v1403_v7, %v1367_v15  ;;  %v786_v45 = vmin.f32 %v754_v59, 6.0  ;;  %v757_v19 = vmax.f32 %v723_v34, 0.0  ;;  %v4320_v34 = vld [vmem:[#allocation2 + $0x1b0] sm:$0xff] }
 0x198   : > { %v4281_v18 = vsel %vm1501_vm4, %v5138_v63, %v5137_v14  ;;  %859 = vst.msk [vmem:[#allocation2 + $0x1c8] sm:$0xff] %vm790_vm2, %v784_v33  ;;  %v756_v16 = vmax.f32 %v718_v20, 0.0  ;;  %v5140_v31 = vmov 0.0   ;;  %v1837_v13 = vsel %vm790_vm2, %v4263_v0, 0.0  ;;  %5141 = vst [vmem:[#allocation28_spill] sm:$0xff] %v4320_v34 }
 0x199   : > { %5139 = vst [vmem:[#allocation25_spill] sm:$0xff] %v4281_v18  ;;  %2733 = vmatprep.subr.mxu0 %v5140_v31  ;;  %2735 = vmatprep.mubr.msk.f32.mxu0 %vm2860_vm5, %v5140_v31  ;;  %v1134_v17 = vmul.f32 %v3172_v42, %v1015_v9  ;;  %v1232_v7 = vadd.f32 %v1200_v61, %v1164_v6  ;;  %v1459_v33 = vrot.slane %v4147_v35, 1  ;;  %862 = vst.msk [vmem:[#allocation2 + $0x1f0] sm:$0xff] %vm790_vm2, %v787_v62  ;;  %v4335_v14 = vld [vmem:[#allocation2 + $0x1a8] sm:$0xff] }
 0x19a   : > { %2740 = vmatprep.mubr.msk.f32.mxu1 %vm2860_vm5, %v5140_v31  ;;  %v1728_v15 = vadd.f32 %v1696_v2, %v1660_v46  ;;  %v1562_v37 = vmul.f32 %v3166_v39, %v4153_v8  ;;  %861 = vst.msk [vmem:[#allocation2 + $0x1e8] sm:$0xff] %vm790_vm2, %v786_v45  ;;  %v789_v32 = vmin.f32 %v757_v19, 6.0  ;;  %v788_v54 = vmin.f32 %v756_v16, 6.0  ;;  %2734 = vmatpush3.msra.mxu0 %v1879_v21  ;;  %v4356_v16 = vld [vmem:[#allocation2 + $0x228] sm:$0xff]  ;;  %v921_v21 = vld [vmem:[#allocation2 + $0x1c0] sm:$0xff] }
 0x19b   : > { %v4302_v59 = vmul.f32 %v3153_v30, %v4202_v26  ;;  %v1404_v6 = vmul.f32 %v3183_v51, %v4202_v26  ;;  %v1067_v9 = vmul.f32 %v3111_v60, %v4197_v50  ;;  %v1133_v2 = vmul.f32 %v3172_v42, %v4197_v50  ;;  %5145 = vst [vmem:[#allocation37_spill] sm:$0xff] %v4335_v14 }
 0x19c   : > { %v1630_v8 = vmul.f32 %v3169_v40, %v4228_v48  ;;  %v4314_v46 = vmul.f32 %v3141_v25, %v4147_v35  ;;  %v4318_v61 = vmul.f32 %v3153_v30, %v4147_v35  ;;  %v1594_v12 = vadd.f32 %v1562_v37, %v1435_v5  ;;  %864 = vst.msk [vmem:[#allocation2 + $0x210] sm:$0xff] %vm790_vm2, %v789_v32  ;;  %v4375_v32 = vld [vmem:[#allocation2 + $0x200] sm:$0xff] }
 0x19d   : > { %863 = vst.msk [vmem:[#allocation2 + $0x208] sm:$0xff] %vm790_vm2, %v788_v54  ;;  %v4325_v50 = vadd.f32 %v1837_v13, %v4206_v23  ;;  %v4328_v27 = vadd.f32 %v4187_v4, %v1366_v29  ;;  %v4332_v20 = vmul.f32 %v4173_v36, %v4281_v18  ;;  %v1300_v35 = vadd.f32 %v4070_v11, %v1232_v7  ;;  %v925_v13 = vld [vmem:[#allocation2 + $0x1e0] sm:$0xff] }
 0x19e   : > { %v1760_v63 = vmax.f32 %v1728_v15, 0.0  ;;  %v4338_v62 = vadd.f32 %v3950_v57, %v1068_v56  ;;  %v4341_v5 = vadd.f32 %v1134_v17, %v4239_v24  ;;  %v5146_v23 = vrot.slane %v4202_v26, 1  ;;  %v933_v56 = vld [vmem:[#allocation2 + $0x220] sm:$0xff]  ;;  %5147 = vst [vmem:[#allocation38_spill] sm:$0xff] %v4356_v16  ;;  %v4367_v17 = vld [vmem:[#allocation2 + $0x230] sm:$0xff] }
 0x19f   : > { %5142 = vst [vmem:[#allocation29_spill] sm:$0xff] %v4325_v50  ;;  %5143 = vst [vmem:[#allocation30_spill] sm:$0xff] %v4328_v27  ;;  %v4348_v29 = vadd.f32 %v3950_v57, %v1067_v9  ;;  %v1165_v45 = vadd.f32 %v1133_v2, %v4235_v47  ;;  %v995_v11 = vrot.slane %v4320_v34, 7  ;;  %v4354_v19 = vmul.f32 %v3141_v25, %v4320_v34 }
 0x1a0   : > { %5144 = vst [vmem:[#allocation31_spill] sm:$0xff] %v4332_v20  ;;  %v1532_v4 = vsel %vm1501_vm4, %v1459_v33, %v5146_v23  ;;  %v1662_v24 = vadd.f32 %v1630_v8, %v1594_v12  ;;  %v4360_v26 = vmul.f32 %v3153_v30, %v4320_v34  ;;  %v4364_v31 = vmul.f32 %v3183_v51, %v4320_v34  ;;  %v4384_v12 = vld [vmem:[#allocation2 + $0x1c8] sm:$0xff]  ;;  %v4389_v23 = vld [vmem:[#allocation2 + $0x1f0] sm:$0xff] }
 0x1a1   : > { %v977_v47 = vrot.slane %v4335_v14, 7  ;;  %v1368_v7 = vadd.f32 %v4183_v43, %v1300_v35  ;;  %v4371_v33 = vmul.f32 %v3169_v40, %v1532_v4  ;;  %v1698_v15 = vmul.f32 %v4173_v36, %v1532_v4  ;;  %5149 = vst [vmem:[#allocation40_spill] sm:$0xff] %v4384_v12  ;;  %v4430_v20 = vld [vmem:[#allocation2 + $0x1d0] sm:$0xff] }
 0x1a2   : > { %v4377_v54 = vmin.f32 %v1760_v63, 6.0  ;;  %v4381_v9 = vmul.f32 %v3166_v39, %v4228_v48  ;;  %v963_v2 = vrot.slane %v933_v56, 7  ;;  %v981_v8 = vrot.slane %v4356_v16, 7  ;;  %v4398_v56 = vld [vmem:[#allocation2 + $0x1e8] sm:$0xff]  ;;  %5154 = vst [vmem:[#allocation44_spill] sm:$0xff] %v4430_v20 }
 0x1a3   : > { %v960_v43 = vrot.slane %v921_v21, 7  ;;  %v4387_v35 = vmul.f32 %v3166_v39, %v1532_v4  ;;  %v961_v37 = vrot.slane %v925_v13, 7  ;;  %v999_v0 = vrot.slane %v4367_v17, 7  ;;  %v4439_v18 = vld [vmem:[#allocation2 + $0x210] sm:$0xff] }
 0x1a4   : > { %5148 = vst [vmem:[#allocation39_spill] sm:$0xff] %v4377_v54  ;;  %v4392_v63 = vadd.f32 %v1698_v15, %v1662_v24  ;;  %v5151_v50 = vrot.slane %v4126_v44, 7  ;;  %v962_v54 = vrot.slane %v4375_v32, 7  ;;  %v4403_v4 = vmul.f32 %v3183_v51, %v4356_v16  ;;  %v4441_v28 = vld [vmem:[#allocation2 + $0x208] sm:$0xff] }
 0x1a5   : > { %v1016_v21 = vsel %vm1002_vm3, %v977_v47, %v995_v11  ;;  %v4409_v24 = vmul.f32 %v3141_v25, %v4335_v14  ;;  %v4413_v44 = vmul.f32 %v3183_v51, %v4367_v17  ;;  %v4419_v13 = vmul.f32 %v3153_v30, %v4335_v14 }
 0x1a6   : > { %5150 = vst [vmem:[#allocation41_spill] sm:$0xff] %v4392_v63  ;;  %v1034_v48 = vsel %vm1002_vm3, %v5151_v50, %v977_v47  ;;  %5152 = vst [vmem:[#allocation42_spill] sm:$0xff] %v4403_v4  ;;  %v4415_v50 = vadd.f32 %v1404_v6, %v1368_v7  ;;  %v978_v15 = vrot.slane %v4384_v12, 7  ;;  %v997_v32 = vrot.slane %v4389_v23, 7 }
 0x1a7   : > { %v1038_v11 = vsel %vm1002_vm3, %v963_v2, %v981_v8  ;;  %v1201_v47 = vmul.f32 %v3208_v1, %v1034_v48  ;;  %v4428_v63 = vmul.f32 %v3183_v51, %v4335_v14  ;;  %v979_v6 = vrot.slane %v4398_v56, 7 }
 0x1a8   : > { %5153 = vst [vmem:[#allocation43_spill] sm:$0xff] %v4415_v50  ;;  %v1020_v7 = vsel %vm1002_vm3, %v981_v8, %v999_v0  ;;  %v1069_v38 = vmul.f32 %v3111_v60, %v1034_v48  ;;  %v1070_v3 = vmul.f32 %v3111_v60, %v1016_v21  ;;  %v1135_v36 = vmul.f32 %v3172_v42, %v1034_v48 }
 0x1a9   : > { %v1202_v2 = vmul.f32 %v3208_v1, %v1016_v21  ;;  %v1136_v40 = vmul.f32 %v3172_v42, %v1016_v21  ;;  %v4446_v50 = vmul.f32 %v3208_v1, %v1038_v11  ;;  %v996_v8 = vrot.slane %v4430_v20, 7 }
 0x1aa   : > { %v1035_v48 = vsel %vm1002_vm3, %v960_v43, %v978_v15  ;;  %v1018_v34 = vsel %vm1002_vm3, %v979_v6, %v997_v32  ;;  %v1210_v22 = vmul.f32 %v3208_v1, %v1020_v7  ;;  %v1233_v58 = vadd.f32 %v1201_v47, %v1165_v45 }
 0x1ab   : > { %v4457_v21 = vmul.f32 %v3141_v25, %v4430_v20  ;;  %v998_v11 = vrot.slane %v4439_v18, 7  ;;  %v980_v55 = vrot.slane %v4441_v28, 7  ;;  %v1101_v0 = vadd.f32 %v3950_v57, %v1069_v38 }
 0x1ac   : > { %v1102_v16 = vadd.f32 %v3950_v57, %v1070_v3  ;;  %v1167_v43 = vadd.f32 %v1135_v36, %v4348_v29  ;;  %v1234_v14 = vadd.f32 %v1202_v2, %v4341_v5  ;;  %v1168_v32 = vadd.f32 %v1136_v40, %v4338_v62 }
 0x1ad   : > { %v1203_v45 = vmul.f32 %v3208_v1, %v1035_v48  ;;  %v1036_v47 = vsel %vm1002_vm3, %v961_v37, %v979_v6  ;;  %v1074_v7 = vmul.f32 %v3111_v60, %v1018_v34  ;;  %v4472_v4 = vmul.f32 %v3153_v30, %v4430_v20 }
 0x1ae   : > { %v4476_v3 = vmul.f32 %v3183_v51, %v4430_v20  ;;  %v1019_v40 = vsel %vm1002_vm3, %v980_v55, %v998_v11  ;;  %v1301_v38 = vadd.f32 %v4212_v49, %v1233_v58  ;;  %v1137_v62 = vmul.f32 %v3172_v42, %v1035_v48 }
 0x1af   : > { %v1275_v5 = vmul.f32 %v3141_v25, %v4384_v12  ;;  %v1037_v29 = vsel %vm1002_vm3, %v962_v54, %v980_v55  ;;  %v4488_v37 = vadd.f32 %v4179_v53, %v1234_v14  ;;  %v1017_v6 = vsel %vm1002_vm3, %v978_v15, %v996_v8 }
 0x1b0   : > { %5155 = vst [vmem:[#allocation45_spill] sm:$0xff] %v4476_v3  ;;  %v1341_v2 = vmul.f32 %v3153_v30, %v4384_v12  ;;  %v1073_v11 = vmul.f32 %v3111_v60, %v1036_v47  ;;  %v1235_v49 = vadd.f32 %v1203_v45, %v1167_v43  ;;  %v1205_v58 = vmul.f32 %v3208_v1, %v1036_v47 }
 0x1b1   : > { %v1106_v36 = vadd.f32 %v3950_v57, %v1074_v7  ;;  %v1142_v20 = vmul.f32 %v3172_v42, %v1019_v40  ;;  %v1071_v55 = vmul.f32 %v3111_v60, %v1035_v48  ;;  %v1407_v53 = vmul.f32 %v3183_v51, %v4384_v12 }
 0x1b2   : > { %v1141_v54 = vmul.f32 %v3172_v42, %v1037_v29  ;;  %v1369_v15 = vadd.f32 %v4318_v61, %v1301_v38  ;;  %v1072_v8 = vmul.f32 %v3111_v60, %v1017_v6  ;;  %v1169_v43 = vadd.f32 %v1137_v62, %v1101_v0 }
 0x1b3   : > { %v1174_v45 = vadd.f32 %v1142_v20, %v1106_v36  ;;  %v1138_v3 = vmul.f32 %v3172_v42, %v1017_v6  ;;  %v1204_v7 = vmul.f32 %v3208_v1, %v1017_v6  ;;  %v1139_v10 = vmul.f32 %v3172_v42, %v1036_v47 }
 0x1b4   : > { %v1105_v48 = vadd.f32 %v3950_v57, %v1073_v11  ;;  %v1303_v27 = vadd.f32 %v4314_v46, %v1235_v49  ;;  %v1206_v14 = vmul.f32 %v3208_v1, %v1018_v34  ;;  %v1237_v12 = vadd.f32 %v1205_v58, %v1169_v43  ;;  %v928_v11 = vld [vmem:[#allocation2 + $0x1f8] sm:$0xff] }
 0x1b5   : > { %v1242_v39 = vadd.f32 %v1210_v22, %v1174_v45  ;;  %v1207_v61 = vmul.f32 %v3208_v1, %v1037_v29  ;;  %v1103_v60 = vadd.f32 %v3950_v57, %v1071_v55  ;;  %v1140_v20 = vmul.f32 %v3172_v42, %v1018_v34 }
 0x1b6   : > { %v1173_v0 = vadd.f32 %v1141_v54, %v1105_v48  ;;  %v1437_v36 = vadd.f32 %v4428_v63, %v1369_v15  ;;  %v1344_v47 = vmul.f32 %v3153_v30, %v4389_v23  ;;  %v4519_v38 = vmul.f32 %v3183_v51, %v4389_v23  ;;  %v920_v48 = vld [vmem:[#allocation2 + $0x1b8] sm:$0xff] }
 0x1b7   : > { %v1278_v46 = vmul.f32 %v3141_v25, %v4389_v23  ;;  %v1208_v22 = vmul.f32 %v3208_v1, %v1019_v40  ;;  %v1104_v62 = vadd.f32 %v3950_v57, %v1072_v8  ;;  %v1170_v29 = vadd.f32 %v1138_v3, %v1102_v16 }
 0x1b8   : > { %v1171_v6 = vadd.f32 %v1139_v10, %v1103_v60  ;;  %v1236_v42 = vadd.f32 %v1204_v7, %v1168_v32  ;;  %v1371_v34 = vadd.f32 %v4419_v13, %v1303_v27  ;;  %v1305_v63 = vadd.f32 %v4409_v24, %v1237_v12 }
 0x1b9   : > { %v1310_v49 = vadd.f32 %v1278_v46, %v1242_v39  ;;  %v1172_v58 = vadd.f32 %v1140_v20, %v1104_v62  ;;  %v1238_v55 = vadd.f32 %v1206_v14, %v1170_v29  ;;  %v1241_v15 = vadd.f32 %v4446_v50, %v1173_v0  ;;  %v5158_v62 = vld [vmem:[#allocation6_spill] sm:$0xff] }
 0x1ba   : > { %v1239_v54 = vadd.f32 %v1207_v61, %v1171_v6  ;;  %v1596_v43 = vadd.f32 %v4381_v9, %v1437_v36  ;;  %v1277_v1 = vmul.f32 %v3141_v25, %v4398_v56  ;;  %v1343_v57 = vmul.f32 %v3153_v30, %v4398_v56  ;;  %v932_v9 = vld [vmem:[#allocation2 + $0x218] sm:$0xff] }
 0x1bb   : > { %v1346_v10 = vmul.f32 %v3153_v30, %v4439_v18  ;;  %v1409_v27 = vmul.f32 %v3183_v51, %v4398_v56  ;;  %v1240_v39 = vadd.f32 %v1208_v22, %v1172_v58  ;;  %v1480_v16 = vrot.slane %v4389_v23, 1  ;;  %v924_v61 = vld [vmem:[#allocation2 + $0x1d8] sm:$0xff] }
 0x1bc   : > { %v1498_v12 = vrot.slane %v928_v11, 1  ;;  %v1439_v24 = vadd.f32 %v1407_v53, %v1371_v34  ;;  %v1462_v50 = vrot.slane %v4398_v56, 1  ;;  %v1304_v13 = vadd.f32 %v4243_v52, %v1236_v42  ;;  %v936_v53 = vld [vmem:[#allocation2 + $0x238] sm:$0xff] }
 0x1bd   : > { %v1378_v25 = vadd.f32 %v1346_v10, %v1310_v49  ;;  %v1373_v32 = vadd.f32 %v1341_v2, %v1305_v63  ;;  %v1306_v3 = vadd.f32 %v4354_v19, %v1238_v55  ;;  %v1307_v40 = vadd.f32 %v1275_v5, %v1239_v54  ;;  %v5160_v49 = vld [vmem:[#allocation42_spill] sm:$0xff] }
 0x1be   : > { %v1309_v14 = vadd.f32 %v1277_v1, %v1241_v15  ;;  %v4542_v8 = vadd.f32 %v4371_v33, %v1596_v43  ;;  %v1412_v45 = vmul.f32 %v3183_v51, %v4439_v18  ;;  %v1345_v23 = vmul.f32 %v3153_v30, %v4441_v28  ;;  %v5162_v55 = vld [vmem:[#allocation18_spill] sm:$0xff]  ;;  %v5163_v43 = vld [vmem:[#allocation28_spill] sm:$0xff] }
 0x1bf   : > { %v1370_v56 = vadd.f32 %v4302_v59, %v4488_v37  ;;  %v1308_v52 = vadd.f32 %v4457_v21, %v1240_v39  ;;  %v1481_v2 = vrot.slane %v4439_v18, 1  ;;  %v1499_v19 = vrot.slane %v932_v9, 1 }
 0x1c0   : > { %v4554_v5 = vsel %vm1501_vm4, %v1480_v16, %v1498_v12  ;;  %v1598_v33 = vadd.f32 %v4387_v35, %v1439_v24  ;;  %v1411_v7 = vmul.f32 %v3183_v51, %v4441_v28  ;;  %v1372_v30 = vadd.f32 %v4360_v26, %v1304_v13  ;;  %v5156_v35 = vld [vmem:[#allocation3_spill] sm:$0xff]  ;;  %v5169_v12 = vld [vmem:[#allocation4_spill] sm:$0xff] }
 0x1c1   : > { %v1446_v59 = vadd.f32 %v4413_v44, %v1378_v25  ;;  %v1441_v37 = vadd.f32 %v1409_v27, %v1373_v32  ;;  %v1374_v21 = vadd.f32 %v4472_v4, %v1306_v3  ;;  %v1375_v18 = vadd.f32 %v1343_v57, %v1307_v40  ;;  %v5157_v44 = vld [vmem:[#allocation30_spill] sm:$0xff]  ;;  %v5159_v4 = vld [vmem:[#allocation45_spill] sm:$0xff]  ;;  %v5171_v32 = vld [vmem:[#allocation44_spill] sm:$0xff] }
 0x1c2   : > { %v1377_v60 = vadd.f32 %v1345_v23, %v1309_v14  ;;  %v1438_v20 = vadd.f32 %v4364_v31, %v1370_v56  ;;  %v1482_v0 = vrot.slane %v4367_v17, 1  ;;  %v1500_v36 = vrot.slane %v936_v53, 1  ;;  %v5165_v57 = vld [vmem:[#allocation37_spill] sm:$0xff]  ;;  %v5168_v27 = vld [vmem:[#allocation10_spill] sm:$0xff]  ;;  %v5173_v40 = vld [vmem:[#allocation40_spill] sm:$0xff] }
 0x1c3   : > { %v1573_v46 = vmul.f32 %v5156_v35, %v4554_v5  ;;  %v1376_v51 = vadd.f32 %v1344_v47, %v1308_v52  ;;  %v1496_v22 = vrot.slane %v920_v48, 1  ;;  %v4568_v26 = vsel %vm1501_vm4, %v1481_v2, %v1499_v19  ;;  %v5161_v47 = vld [vmem:[#allocation36_spill] sm:$0xff]  ;;  %v5175_v56 = vld [vmem:[#allocation19_spill] sm:$0xff] }
 0x1c4   : > { %v1593_v29 = vadd.f32 %v5158_v62, %v5157_v44  ;;  %v1440_v6 = vadd.f32 %v5159_v4, %v1372_v30  ;;  %v1463_v42 = vrot.slane %v4441_v28, 1  ;;  %v1497_v31 = vrot.slane %v924_v61, 1  ;;  %v5177_v30 = vld [vmem:[#allocation25_spill] sm:$0xff]  ;;  %v5182_v4 = vld [vmem:[#allocation35_spill] sm:$0xff] }
 0x1c5   : > { %v1605_v34 = vadd.f32 %v1573_v46, %v1446_v59  ;;  %v1442_v63 = vadd.f32 %v4519_v38, %v1374_v21  ;;  %v1443_v11 = vadd.f32 %v1411_v7, %v1375_v18  ;;  %v4576_v58 = vadd.f32 %v5160_v49, %v1377_v60  ;;  %v5167_v38 = vld [vmem:[#allocation43_spill] sm:$0xff]  ;;  %v5178_v21 = vld [vmem:[#allocation13_spill] sm:$0xff]  ;;  %v5179_v60 = vld [vmem:[#allocation20_spill] sm:$0xff] }
 0x1c6   : > { %v1659_v54 = vadd.f32 %v5162_v55, %v5161_v47  ;;  %v1519_v15 = vsel %vm1501_vm4, %v1482_v0, %v1500_v36  ;;  %v5164_v1 = vrot.slane %v5163_v43, 1  ;;  %v5166_v28 = vrot.slane %v5165_v57, 1  ;;  %v5183_v57 = vld [vmem:[#allocation31_spill] sm:$0xff] }
 0x1c7   : > { %v1595_v39 = vadd.f32 %v5168_v27, %v5167_v38  ;;  %v1641_v24 = vmul.f32 %v5169_v12, %v4568_v26  ;;  %v1444_v9 = vadd.f32 %v1412_v45, %v1376_v51  ;;  %v5172_v3 = vrot.slane %v5171_v32, 1 }
 0x1c8   : > { %v1533_v10 = vsel %vm1501_vm4, %v5166_v28, %v5164_v1  ;;  %v5170_v13 = vmov %v5164_v1  ;;  %v5174_v14 = vrot.slane %v5173_v40, 1  ;;  %v1661_v53 = vadd.f32 %v5175_v56, %v1593_v29 }
 0x1c9   : > { %v1515_v25 = vsel %vm1501_vm4, %v5170_v13, %v1496_v22  ;;  %v5176_v52 = vmov %v5172_v3  ;;  %v1535_v45 = vsel %vm1501_vm4, %v1462_v50, %v1480_v16  ;;  %v4613_v7 = vsel %vm1501_vm4, %v1463_v42, %v1481_v2  ;;  %v5180_v22 = vld [vmem:[#allocation12_spill] sm:$0xff]  ;;  %v5181_v50 = vld [vmem:[#allocation23_spill] sm:$0xff] }
 0x1ca   : > { %v1534_v23 = vsel %vm1501_vm4, %v5174_v14, %v5172_v3  ;;  %v1516_v19 = vsel %vm1501_vm4, %v5176_v52, %v1497_v31  ;;  %v1673_v48 = vadd.f32 %v1641_v24, %v1605_v34  ;;  %v1567_v59 = vmul.f32 %v5156_v35, %v5177_v30  ;;  %v5184_v24 = vld [vmem:[#allocation41_spill] sm:$0xff] }
 0x1cb   : > { %v1568_v61 = vmul.f32 %v5156_v35, %v1533_v10  ;;  %v1709_v18 = vmul.f32 %v5178_v21, %v1519_v15  ;;  %v1727_v36 = vadd.f32 %v5179_v60, %v1659_v54  ;;  %v1569_v46 = vmul.f32 %v5156_v35, %v1515_v25 }
 0x1cc   : > { %v1570_v51 = vmul.f32 %v5156_v35, %v1534_v23  ;;  %v1597_v16 = vadd.f32 %v5180_v22, %v1438_v20  ;;  %v1663_v44 = vadd.f32 %v5181_v50, %v1595_v39  ;;  %v1571_v2 = vmul.f32 %v5156_v35, %v1516_v19 }
 0x1cd   : > { %v1572_v62 = vmul.f32 %v5156_v35, %v1535_v45  ;;  %v1633_v29 = vmul.f32 %v5169_v12, %v5177_v30  ;;  %v1729_v42 = vadd.f32 %v5182_v4, %v1661_v53  ;;  %v1634_v31 = vmul.f32 %v5169_v12, %v1533_v10  ;;  %v5187_v4 = vld [vmem:[#allocation38_spill] sm:$0xff] }
 0x1ce   : > { %v1700_v34 = vmul.f32 %v5178_v21, %v1533_v10  ;;  %v4631_v49 = vadd.f32 %v1709_v18, %v1673_v48  ;;  %v1759_v47 = vmax.f32 %v1727_v36, 0.0  ;;  %v1599_v55 = vadd.f32 %v1567_v59, %v1440_v6 }
 0x1cf   : > { %v1600_v20 = vadd.f32 %v1568_v61, %v1441_v37  ;;  %v1601_v54 = vadd.f32 %v1569_v46, %v1442_v63  ;;  %v1602_v15 = vadd.f32 %v1570_v51, %v1443_v11  ;;  %v1665_v43 = vadd.f32 %v1633_v29, %v1597_v16  ;;  %v5186_v61 = vld [vmem:[#allocation29_spill] sm:$0xff] }
 0x1d0   : > { %v1666_v1 = vadd.f32 %v1634_v31, %v1598_v33  ;;  %v1731_v35 = vadd.f32 %v5183_v57, %v1663_v44  ;;  %v1732_v28 = vadd.f32 %v1700_v34, %v4542_v8  ;;  %v1635_v38 = vmul.f32 %v5169_v12, %v1515_v25 }
 0x1d1   : > { %v1636_v27 = vmul.f32 %v5169_v12, %v1534_v23  ;;  %v1761_v39 = vmax.f32 %v1729_v42, 0.0  ;;  %v1762_v10 = vmax.f32 %v5184_v24, 0.0  ;;  %v1637_v13 = vmul.f32 %v5169_v12, %v1516_v19 }
 0x1d2   : > { %v1701_v6 = vmul.f32 %v5178_v21, %v1515_v25  ;;  %v1702_v37 = vmul.f32 %v5178_v21, %v1534_v23  ;;  %v4641_v63 = vmin.f32 %v1759_v47, 6.0  ;;  %v1638_v33 = vmul.f32 %v5169_v12, %v1535_v45  ;;  %v5185_v23 = vld [vmem:[#allocation39_spill] sm:$0xff] }
 0x1d3   : > { %v1667_v11 = vadd.f32 %v1635_v38, %v1599_v55  ;;  %v1668_v32 = vadd.f32 %v1636_v27, %v1600_v20  ;;  %v1703_v8 = vmul.f32 %v5178_v21, %v1516_v19  ;;  %v1763_v14 = vmax.f32 %v1731_v35, 0.0 }
 0x1d4   : > { %v1733_v3 = vadd.f32 %v1701_v6, %v1665_v43  ;;  %v1734_v40 = vadd.f32 %v1702_v37, %v1666_v1  ;;  %v1764_v56 = vmax.f32 %v1732_v28, 0.0  ;;  %v4645_v53 = vmin.f32 %v1761_v39, 6.0 }
 0x1d5   : > { %v4647_v52 = vmin.f32 %v1762_v10, 6.0  ;;  %v1839_v25 = vsel %vm790_vm2, %v4641_v63, 0.0  ;;  %v1841_v48 = vsel %vm790_vm2, %v5185_v23, 0.0  ;;  %v1603_v30 = vadd.f32 %v1571_v2, %v1444_v9 }
 0x1d6   : > { %v1639_v59 = vmul.f32 %v5169_v12, %v4554_v5  ;;  %v1704_v19 = vmul.f32 %v5178_v21, %v1535_v45  ;;  %v1840_v18 = vadd.f32 %v1839_v25, %v5186_v61  ;;  %v1669_v60 = vadd.f32 %v1637_v13, %v1601_v54 }
 0x1d7   : > { %v1670_v36 = vadd.f32 %v1638_v33, %v1602_v15  ;;  %v1705_v46 = vmul.f32 %v5178_v21, %v4554_v5  ;;  %v1735_v51 = vadd.f32 %v1703_v8, %v1667_v11  ;;  %v1765_v16 = vmax.f32 %v1733_v3, 0.0 }
 0x1d8   : > { %v1736_v22 = vadd.f32 %v1704_v19, %v1668_v32  ;;  %v1766_v50 = vmax.f32 %v1734_v40, 0.0  ;;  %v1842_v44 = vadd.f32 %v1841_v48, %v1840_v18  ;;  %v4659_v29 = vmin.f32 %v1763_v14, 6.0 }
 0x1d9   : > { %v4661_v9 = vmin.f32 %v1764_v56, 6.0  ;;  %v1843_v2 = vsel %vm790_vm2, %v4645_v53, 0.0  ;;  %v1845_v45 = vsel %vm790_vm2, %v4647_v52, 0.0  ;;  %v5188_v42 = vrot.slane %v5187_v4, 1 }
 0x1da   : > { %v1706_v31 = vmul.f32 %v5178_v21, %v4613_v7  ;;  %v1844_v34 = vadd.f32 %v1843_v2, %v1842_v44  ;;  %v1604_v47 = vadd.f32 %v1572_v62, %v4576_v58  ;;  %v1640_v55 = vmul.f32 %v5169_v12, %v4613_v7 }
 0x1db   : > { %v1537_v5 = vsel %vm1501_vm4, %v5188_v42, %v1482_v0  ;;  %v1671_v20 = vadd.f32 %v1639_v59, %v1603_v30  ;;  %v1737_v54 = vadd.f32 %v1705_v46, %v1669_v60  ;;  %v1767_v43 = vmax.f32 %v1735_v51, 0.0 }
 0x1dc   : > { %v1738_v15 = vadd.f32 %v1706_v31, %v1670_v36  ;;  %v1768_v1 = vmax.f32 %v1736_v22, 0.0  ;;  %v1846_v17 = vadd.f32 %v1845_v45, %v1844_v34  ;;  %v4678_v57 = vmin.f32 %v1765_v16, 6.0  ;;  %v1955_v34 = vld [vmem:[%s4988_s7] sm:$0xff] }
 0x1dd   : > { %v4680_v35 = vmin.f32 %v1766_v50, 6.0  ;;  %v1847_v0 = vsel %vm790_vm2, %v4659_v29, 0.0  ;;  %v1849_v28 = vsel %vm790_vm2, %v4661_v9, 0.0  ;;  %v1707_v58 = vmul.f32 %v5178_v21, %v4568_v26  ;;  %2739 = vmatpush3.msra.mxu1 %v1955_v34 }
 0x1de   : > { %v1848_v12 = vadd.f32 %v1847_v0, %v1846_v17  ;;  %v1672_v7 = vadd.f32 %v1640_v55, %v1604_v47  ;;  %v1708_v62 = vmul.f32 %v5178_v21, %v1537_v5  ;;  %v1769_v27 = vmax.f32 %v1737_v54, 0.0  ;;  %v1880_v47 = vld [vmem:[%s4987_s6] sm:$0x1]  ;;  %v2073_v0 = vld [vmem:[%s4989_s8 + $0x10] sm:$0xff] }
 0x1df   : > { %v1739_v38 = vadd.f32 %v1707_v58, %v1671_v20  ;;  %v1770_v39 = vmax.f32 %v1738_v15, 0.0  ;;  %v4689_v10 = vmin.f32 %v1767_v43, 6.0  ;;  %v4691_v13 = vmin.f32 %v1768_v1, 6.0  ;;  %v2071_v43 = vld [vmem:[%s4989_s8] sm:$0xff]  ;;  %v2072_v1 = vld [vmem:[%s4989_s8 + $0x8] sm:$0xff] }
 0x1e0   : > { %v1850_v24 = vadd.f32 %v1849_v28, %v1848_v12  ;;  %v1851_v6 = vsel %vm790_vm2, %v4678_v57, 0.0  ;;  %v1853_v37 = vsel %vm790_vm2, %v4680_v35, 0.0  ;;  %v1740_v26 = vadd.f32 %v1708_v62, %v1672_v7 }
 0x1e1   : > { %v1771_v11 = vmax.f32 %v1739_v38, 0.0  ;;  %v4697_v8 = vmin.f32 %v1769_v27, 6.0  ;;  %v4699_v21 = vmin.f32 %v1770_v39, 6.0  ;;  %v1855_v3 = vsel %vm790_vm2, %v4689_v10, 0.0 }
 0x1e2   : > { %v1852_v33 = vadd.f32 %v1851_v6, %v1850_v24  ;;  %v1857_v40 = vsel %vm790_vm2, %v4691_v13, 0.0  ;;  %v1772_v56 = vmax.f32 %v1740_v26, 0.0  ;;  %v1773_v48 = vmax.f32 %v4631_v49, 0.0  ;;  %v5190_v24 = vld [vmem:[#allocation27_spill] sm:$0xff]  ;;  %v5192_v26 = vld [vmem:[#allocation32_spill] sm:$0xff] }
 0x1e3   : > { %v4706_v30 = vmin.f32 %v1771_v11, 6.0  ;;  %v1859_v59 = vsel %vm790_vm2, %v4697_v8, 0.0  ;;  %v1861_v19 = vsel %vm790_vm2, %v4699_v21, 0.0  ;;  %v2800_v17 = vpack.c.bf16 %v2072_v1, %v2071_v43 }
 0x1e4   : > { %v1854_v32 = vadd.f32 %v1853_v37, %v1852_v33  ;;  %v4712_v18 = vmin.f32 %v1772_v56, 6.0  ;;  %v4714_v36 = vmin.f32 %v1773_v48, 6.0  ;;  %v5189_v27 = vsub.s32 0, %v3089_v41  ;;  %v5191_v37 = vld [vmem:[#allocation26_spill] sm:$0xff] }
 0x1e5   : > { %v1863_v46 = vsel %vm790_vm2, %v4706_v30, 0.0  ;;  %2801 = vmatprep.subr.bf16.mxu1 %v2800_v17 }
 0x1e6   : > { %v1856_v14 = vadd.f32 %v1855_v3, %v1854_v32  ;;  %v1865_v49 = vsel %vm790_vm2, %v4712_v18, 0.0  ;;  %v1867_v16 = vsel %vm790_vm2, %v4714_v36, 0.0  ;;  %v5193_v32 = vld [vmem:[#allocation33_spill] sm:$0xff]  ;;  %v5194_v3 = vld [vmem:[#allocation34_spill] sm:$0xff] }
 0x1e8   : > { %v1858_v25 = vadd.f32 %v1857_v40, %v1856_v14  ;;  %v5195_v14 = vld [vmem:[#allocation14_spill] sm:$0xff] }
 0x1ea   : > { %v1860_v61 = vadd.f32 %v1859_v59, %v1858_v25  ;;  %v5196_v25 = vld [vmem:[#allocation15_spill] sm:$0xff]  ;;  %v5197_v59 = vld [vmem:[#allocation16_spill] sm:$0xff] }
 0x1ec   : > { %v1862_v60 = vadd.f32 %v1861_v19, %v1860_v61  ;;  %v5198_v61 = vld [vmem:[#allocation5_spill] sm:$0xff] }
 0x1ee   : > { %v1864_v51 = vadd.f32 %v1863_v46, %v1862_v60  ;;  %v5199_v46 = vld [vmem:[#allocation7_spill] sm:$0xff] }
 0x1f0   : > { %v1866_v22 = vadd.f32 %v1865_v49, %v1864_v51  ;;  %v5200_v49 = vld [vmem:[#allocation17_spill] sm:$0xff] }
 0x1f2   : > { %v1868_v50 = vadd.f32 %v1867_v16, %v1866_v22  ;;  %v5201_v16 = vld [vmem:[#allocation9_spill] sm:$0xff] }
 0x1f4   : > { %v1869_v44 = vrot.slane %v1868_v50, 4 }
 0x1f6   : > { %v1870_v2 = vadd.f32 %v1869_v44, %v1868_v50  ;;  %v5202_v44 = vld [vmem:[#allocation11_spill] sm:$0xff] }
 0x1f8   : > { %v1871_v45 = vrot.slane %v1870_v2, 2 }
 0x1fa   : > { %v1872_v4 = vadd.f32 %v1871_v45, %v1870_v2  ;;  %v5203_v45 = vld [vmem:[#allocation8_spill] sm:$0xff] }
 0x1fc   : > { %v1873_v42 = vrot.slane %v1872_v4, 1 }
 0x1fe   : > { %v1874_v5 = vadd.f32 %v1873_v42, %v1872_v4  ;;  %v5204_v42 = vld [vmem:[#allocation21_spill] sm:$0xff] }
 0x200   : > { %v1876_v31 = vmul.f32 0.00390625, %v1874_v5 }
 0x202   : > { %2736 = vmatmul.mubr.msk.f32.vlgmr.msra.gmra.mrb[32].mxu0 %vm790_vm2, %v1876_v31  ;;  %v5205_v31 = vld [vmem:[#allocation22_spill] sm:$0xff] }
 0x2d5   : > { %v1950_v55 = vpop.f32.mrb[32].mxu0 }
 0x2d6   : > { %v1951_v20 = vadd.f32 %v1950_v55, %v1880_v47  ;;  %v2737_v54 = vpop.f32.mrb[33].mxu0  ;;  %v5206_v47 = vld [vmem:[#allocation24_spill] sm:$0xff] }
 0x2d8   : > { %v1954_v15 = vmax.f32 %v1951_v20, 0.0 }
 0x2da   : > { %2741 = vmatmul.mubr.msk.f32.vlgmr.msra.gmra.mrb[0].mxu1 %vm1956_vm6, %v1954_v15 }
 0x2db   : > { %2803 = vmatpush3.bf16.msra.mxu1 %v2800_v17  ;;  %v2818_v17 = vld [vmem:[%s2935_s20 + $0x8] sm:$0xff] }
 0x2dc   : > { %2747 = vmatprep.subr.mxu1 %v2073_v0 }
 0x2df   : > { %2748 = vmatpush3.msra.mxu1 %v2073_v0 }
 0x3ad   : > { %v2026_v28 = vpop.f32.mrb[0].mxu1 }
 0x3ae   : > { %v2031_v58 = vmul.f32 0.16666667, %v2026_v28  ;;  %v2742_v12 = vpop.f32.mrb[1].mxu1  ;;  %v2819_v28 = vld [vmem:[%s2935_s20] sm:$0xff] }
 0x3b0   : > { %v2032_v7 = vadd.f32 0.5, %v2031_v58 }
 0x3b2   : > { %v2033_v62 = vmax.f32 %v2032_v7, 0.0 }
 0x3b4   : > { %v2034_v38 = vmin.f32 %v2033_v62, 1.0 }
 0x3b6   : > { %v4740_v39 = vrot.slane %v2034_v38, %v5189_v27  ;;  %v2820_v27 = vld [vmem:[%s2935_s20 + $0x18] sm:$0xff] }
 0x3b8   : > { %v2039_v6 = vmul.f32 %v4740_v39, %v5190_v24  ;;  %v2040_v33 = vmul.f32 %v4740_v39, %v5191_v37  ;;  %v2041_v11 = vmul.f32 %v4740_v39, %v5192_v26  ;;  %v2042_v41 = vmul.f32 %v4740_v39, %v5193_v32  ;;  %v2821_v24 = vld [vmem:[%s2935_s20 + $0x10] sm:$0xff]  ;;  %v2822_v32 = vld [vmem:[%s2935_s20 + $0x28] sm:$0xff] }
 0x3b9   : > { %v2043_v40 = vmul.f32 %v4740_v39, %v5194_v3  ;;  %v2044_v56 = vmul.f32 %v4740_v39, %v5195_v14  ;;  %v2045_v48 = vmul.f32 %v4740_v39, %v5196_v25  ;;  %v2046_v19 = vmul.f32 %v4740_v39, %v5197_v59  ;;  %v2823_v3 = vld [vmem:[%s2935_s20 + $0x20] sm:$0xff]  ;;  %v2824_v59 = vld [vmem:[%s2935_s20 + $0x38] sm:$0xff] }
 0x3ba   : > { %2749 = vmatprep.mubr.msk.f32.mxu1 %vm790_vm2, %v2039_v6  ;;  %v2047_v60 = vmul.f32 %v4740_v39, %v5198_v61  ;;  %v2048_v51 = vmul.f32 %v4740_v39, %v5199_v46  ;;  %v2049_v22 = vmul.f32 %v4740_v39, %v5200_v49  ;;  %v2050_v50 = vmul.f32 %v4740_v39, %v5201_v16  ;;  %v2825_v61 = vld [vmem:[%s2935_s20 + $0x30] sm:$0xff]  ;;  %v2826_v16 = vld [vmem:[%s2935_s20 + $0x48] sm:$0xff] }
 0x3bb   : > { %2750 = vmatmul.mubr.msk.f32.vlgmr.msra.gmra.mrb[2].mxu1 %vm790_vm2, %v2040_v33  ;;  %v2051_v2 = vmul.f32 %v4740_v39, %v5202_v44  ;;  %v2052_v4 = vmul.f32 %v4740_v39, %v5203_v45  ;;  %v2053_v5 = vmul.f32 %v4740_v39, %v5204_v42  ;;  %v2054_v34 = vmul.f32 %v4740_v39, %v5205_v31  ;;  %v2827_v44 = vld [vmem:[%s2935_s20 + $0x40] sm:$0xff]  ;;  %v2828_v31 = vld [vmem:[%s2935_s20 + $0x58] sm:$0xff] }
 0x3bc   : > { %2752 = vmatprep.mubr.msk.f32.mxu1 %vm790_vm2, %v2041_v11  ;;  %v2055_v55 = vmul.f32 %v4740_v39, %v5206_v47  ;;  %v2056_v20 = vmul.f32 %v4740_v39, %v4641_v63  ;;  %v2057_v54 = vmul.f32 %v4740_v39, %v5185_v23  ;;  %v2058_v15 = vmul.f32 %v4740_v39, %v4645_v53  ;;  %v2829_v47 = vld [vmem:[%s2935_s20 + $0x50] sm:$0xff] }
 0x3bd   : > { %v2059_v43 = vmul.f32 %v4740_v39, %v4647_v52  ;;  %v2060_v63 = vmul.f32 %v4740_v39, %v4659_v29  ;;  %v2061_v23 = vmul.f32 %v4740_v39, %v4661_v9  ;;  %v2062_v53 = vmul.f32 %v4740_v39, %v4678_v57 }
 0x3be   : > { %v2063_v52 = vmul.f32 %v4740_v39, %v4680_v35  ;;  %v2064_v29 = vmul.f32 %v4740_v39, %v4689_v10  ;;  %v2065_v9 = vmul.f32 %v4740_v39, %v4691_v13  ;;  %v2066_v57 = vmul.f32 %v4740_v39, %v4697_v8 }
 0x3bf   : > { %2753 = vmatmul.mubr.msk.f32.gmra.mrb[4].mxu1 %vm790_vm2, %v2042_v41  ;;  %v2067_v35 = vmul.f32 %v4740_v39, %v4699_v21  ;;  %v2068_v10 = vmul.f32 %v4740_v39, %v4706_v30  ;;  %v2069_v13 = vmul.f32 %v4740_v39, %v4712_v18  ;;  %v2070_v8 = vmul.f32 %v4740_v39, %v4714_v36  ;;  %v4841_v21 = vld [vmem:[%s4990_s9] ss:$0 sm:$0xff] }
 0x3c0   : > { %2755 = vmatprep.mubr.msk.f32.mxu1 %vm790_vm2, %v2043_v40 }
 0x3c3   : > { %2756 = vmatmul.mubr.msk.f32.gmra.mrb[6].mxu1 %vm790_vm2, %v2044_v56 }
 0x3c4   : > { %2758 = vmatprep.mubr.msk.f32.mxu1 %vm790_vm2, %v2045_v48 }
 0x3c7   : > { %2759 = vmatmul.mubr.msk.f32.gmra.mrb[8].mxu1 %vm790_vm2, %v2046_v19 }
 0x3c8   : > { %2761 = vmatprep.mubr.msk.f32.mxu1 %vm790_vm2, %v2047_v60 }
 0x3cb   : > { %2762 = vmatmul.mubr.msk.f32.gmra.mrb[10].mxu1 %vm790_vm2, %v2048_v51 }
 0x3cc   : > { %2764 = vmatprep.mubr.msk.f32.mxu1 %vm790_vm2, %v2049_v22 }
 0x3cf   : > { %2765 = vmatmul.mubr.msk.f32.gmra.mrb[12].mxu1 %vm790_vm2, %v2050_v50 }
 0x3d0   : > { %2767 = vmatprep.mubr.msk.f32.mxu1 %vm790_vm2, %v2051_v2 }
 0x3d3   : > { %2768 = vmatmul.mubr.msk.f32.gmra.mrb[14].mxu1 %vm790_vm2, %v2052_v4 }
 0x3d4   : > { %2770 = vmatprep.mubr.msk.f32.mxu1 %vm790_vm2, %v2053_v5 }
 0x3d7   : > { %2771 = vmatmul.mubr.msk.f32.gmra.mrb[16].mxu1 %vm790_vm2, %v2054_v34 }
 0x3d8   : > { %2773 = vmatprep.mubr.msk.f32.mxu1 %vm790_vm2, %v2055_v55 }
 0x3db   : > { %2774 = vmatmul.mubr.msk.f32.gmra.mrb[18].mxu1 %vm790_vm2, %v2056_v20 }
 0x3dc   : > { %2776 = vmatprep.mubr.msk.f32.mxu1 %vm790_vm2, %v2057_v54 }
 0x3df   : > { %2777 = vmatmul.mubr.msk.f32.gmra.mrb[20].mxu1 %vm790_vm2, %v2058_v15 }
 0x3e0   : > { %2779 = vmatprep.mubr.msk.f32.mxu1 %vm790_vm2, %v2059_v43 }
 0x3e3   : > { %2780 = vmatmul.mubr.msk.f32.gmra.mrb[22].mxu1 %vm790_vm2, %v2060_v63  ;;  %v2830_v63 = vld [vmem:[%s2935_s20 + $0x68] sm:$0xff] }
 0x3e4   : > { %2782 = vmatprep.mubr.msk.f32.mxu1 %vm790_vm2, %v2061_v23 }
 0x3e7   : > { %2783 = vmatmul.mubr.msk.f32.gmra.mrb[24].mxu1 %vm790_vm2, %v2062_v53  ;;  %v2831_v53 = vld [vmem:[%s2935_s20 + $0x60] sm:$0xff] }
 0x3e8   : > { %2785 = vmatprep.mubr.msk.f32.mxu1 %vm790_vm2, %v2063_v52 }
 0x3eb   : > { %2786 = vmatmul.mubr.msk.f32.gmra.mrb[26].mxu1 %vm790_vm2, %v2064_v29 }
 0x3ec   : > { %2788 = vmatprep.mubr.msk.f32.mxu1 %vm790_vm2, %v2065_v9 }
 0x3ef   : > { %2789 = vmatmul.mubr.msk.f32.gmra.mrb[28].mxu1 %vm790_vm2, %v2066_v57 }
 0x3f0   : > { %2791 = vmatprep.mubr.msk.f32.mxu1 %vm790_vm2, %v2067_v35 }
 0x3f3   : > { %2792 = vmatmul.mubr.msk.f32.gmra.mrb[30].mxu1 %vm790_vm2, %v2068_v10  ;;  %v2832_v10 = vld [vmem:[%s2935_s20 + $0x78] sm:$0xff] }
 0x3f4   : > { %2794 = vmatprep.mubr.msk.f32.mxu1 %vm790_vm2, %v2069_v13 }
 0x3f7   : > { %2795 = vmatmul.mubr.msk.f32.gmra.mrb[32].mxu1 %vm790_vm2, %v2070_v8  ;;  %v2833_v8 = vld [vmem:[%s2935_s20 + $0x70] sm:$0xff] }
 0x48e   : > { %v2751_v1 = vpop.f32.mrb[2].mxu1 }
 0x48f   : > { %v2249_v30 = vadd.f32 %v2751_v1, %v4841_v21  ;;  %v2243_v18 = vpop.f32.mrb[3].mxu1 }
 0x490   : > { %v2244_v36 = vadd.f32 %v4841_v21, %v2243_v18 }
 0x491   : > { %v2403_v0 = vadd.f32 %v2818_v17, %v2249_v30 }
 0x492   : > { %v2402_v58 = vadd.f32 %v2819_v28, %v2244_v36  ;;  %v2754_v12 = vpop.f32.mrb[4].mxu1 }
 0x493   : > { %2435 = vst.msk [vmem:[%s4849_s23 + $0x8] sm:$0xff] %vm400_vm1, %v2403_v0  ;;  %v2259_v7 = vadd.f32 %v2754_v12, %v4841_v21  ;;  %v2253_v62 = vpop.f32.mrb[5].mxu1  ;;  %v2834_v0 = vld [vmem:[%s2935_s20 + $0x88] sm:$0xff] }
 0x494   : > { %2434 = vst.msk [vmem:[%s4849_s23] sm:$0xff] %vm400_vm1, %v2402_v58  ;;  %v2254_v38 = vadd.f32 %v4841_v21, %v2253_v62  ;;  %v2835_v58 = vld [vmem:[%s2935_s20 + $0x80] sm:$0xff] }
 0x495   : > { %v2405_v39 = vadd.f32 %v2820_v27, %v2259_v7 }
 0x496   : > { %v2404_v6 = vadd.f32 %v2821_v24, %v2254_v38  ;;  %v2757_v37 = vpop.f32.mrb[6].mxu1 }
 0x497   : > { %2437 = vst.msk [vmem:[%s4849_s23 + $0x18] sm:$0xff] %vm400_vm1, %v2405_v39  ;;  %v2269_v33 = vadd.f32 %v2757_v37, %v4841_v21  ;;  %v2263_v26 = vpop.f32.mrb[7].mxu1  ;;  %v2836_v39 = vld [vmem:[%s2935_s20 + $0x98] sm:$0xff] }
 0x498   : > { %2436 = vst.msk [vmem:[%s4849_s23 + $0x10] sm:$0xff] %vm400_vm1, %v2404_v6  ;;  %v2264_v11 = vadd.f32 %v4841_v21, %v2263_v26  ;;  %v2837_v6 = vld [vmem:[%s2935_s20 + $0x90] sm:$0xff] }
 0x499   : > { %v2407_v41 = vadd.f32 %v2822_v32, %v2269_v33 }
 0x49a   : > { %v2406_v40 = vadd.f32 %v2823_v3, %v2264_v11  ;;  %v2760_v14 = vpop.f32.mrb[8].mxu1 }
 0x49b   : > { %2439 = vst.msk [vmem:[%s4849_s23 + $0x28] sm:$0xff] %vm400_vm1, %v2407_v41  ;;  %v2279_v56 = vadd.f32 %v2760_v14, %v4841_v21  ;;  %v2273_v25 = vpop.f32.mrb[9].mxu1  ;;  %v2838_v41 = vld [vmem:[%s2935_s20 + $0xa8] sm:$0xff] }
 0x49c   : > { %2438 = vst.msk [vmem:[%s4849_s23 + $0x20] sm:$0xff] %vm400_vm1, %v2406_v40  ;;  %v2274_v48 = vadd.f32 %v4841_v21, %v2273_v25  ;;  %v2839_v40 = vld [vmem:[%s2935_s20 + $0xa0] sm:$0xff] }
 0x49d   : > { %v2409_v19 = vadd.f32 %v2824_v59, %v2279_v56 }
 0x49e   : > { %v2408_v60 = vadd.f32 %v2825_v61, %v2274_v48  ;;  %v2763_v46 = vpop.f32.mrb[10].mxu1 }
 0x49f   : > { %2441 = vst.msk [vmem:[%s4849_s23 + $0x38] sm:$0xff] %vm400_vm1, %v2409_v19  ;;  %v2289_v51 = vadd.f32 %v2763_v46, %v4841_v21  ;;  %v2283_v49 = vpop.f32.mrb[11].mxu1  ;;  %v2840_v19 = vld [vmem:[%s2935_s20 + $0xb8] sm:$0xff] }
 0x4a0   : > { %2440 = vst.msk [vmem:[%s4849_s23 + $0x30] sm:$0xff] %vm400_vm1, %v2408_v60  ;;  %v2284_v22 = vadd.f32 %v4841_v21, %v2283_v49  ;;  %v2841_v60 = vld [vmem:[%s2935_s20 + $0xb0] sm:$0xff] }
 0x4a1   : > { %v2411_v50 = vadd.f32 %v2826_v16, %v2289_v51 }
 0x4a2   : > { %v2410_v2 = vadd.f32 %v2827_v44, %v2284_v22  ;;  %v2766_v45 = vpop.f32.mrb[12].mxu1 }
 0x4a3   : > { %2443 = vst.msk [vmem:[%s4849_s23 + $0x48] sm:$0xff] %vm400_vm1, %v2411_v50  ;;  %v2299_v4 = vadd.f32 %v2766_v45, %v4841_v21  ;;  %v2293_v42 = vpop.f32.mrb[13].mxu1  ;;  %v2842_v50 = vld [vmem:[%s2935_s20 + $0xc8] sm:$0xff] }
 0x4a4   : > { %2442 = vst.msk [vmem:[%s4849_s23 + $0x40] sm:$0xff] %vm400_vm1, %v2410_v2  ;;  %v2294_v5 = vadd.f32 %v4841_v21, %v2293_v42  ;;  %v2843_v2 = vld [vmem:[%s2935_s20 + $0xc0] sm:$0xff] }
 0x4a5   : > { %v2413_v34 = vadd.f32 %v2828_v31, %v2299_v4 }
 0x4a6   : > { %v2412_v55 = vadd.f32 %v2829_v47, %v2294_v5  ;;  %v2769_v20 = vpop.f32.mrb[14].mxu1 }
 0x4a7   : > { %2445 = vst.msk [vmem:[%s4849_s23 + $0x58] sm:$0xff] %vm400_vm1, %v2413_v34  ;;  %v2309_v54 = vadd.f32 %v2769_v20, %v4841_v21  ;;  %v2303_v15 = vpop.f32.mrb[15].mxu1  ;;  %v2844_v34 = vld [vmem:[%s2935_s20 + $0xd8] sm:$0xff] }
 0x4a8   : > { %2444 = vst.msk [vmem:[%s4849_s23 + $0x50] sm:$0xff] %vm400_vm1, %v2412_v55  ;;  %v2304_v43 = vadd.f32 %v4841_v21, %v2303_v15  ;;  %v2845_v55 = vld [vmem:[%s2935_s20 + $0xd0] sm:$0xff] }
 0x4a9   : > { %v2415_v23 = vadd.f32 %v2830_v63, %v2309_v54 }
 0x4aa   : > { %v2414_v52 = vadd.f32 %v2831_v53, %v2304_v43  ;;  %v2772_v29 = vpop.f32.mrb[16].mxu1 }
 0x4ab   : > { %2447 = vst.msk [vmem:[%s4849_s23 + $0x68] sm:$0xff] %vm400_vm1, %v2415_v23  ;;  %v2319_v9 = vadd.f32 %v2772_v29, %v4841_v21  ;;  %v2313_v57 = vpop.f32.mrb[17].mxu1  ;;  %v2846_v23 = vld [vmem:[%s2935_s20 + $0xe8] sm:$0xff] }
 0x4ac   : > { %2446 = vst.msk [vmem:[%s4849_s23 + $0x60] sm:$0xff] %vm400_vm1, %v2414_v52  ;;  %v2314_v35 = vadd.f32 %v4841_v21, %v2313_v57  ;;  %v2847_v52 = vld [vmem:[%s2935_s20 + $0xe0] sm:$0xff] }
 0x4ad   : > { %v2417_v13 = vadd.f32 %v2832_v10, %v2319_v9 }
 0x4ae   : > { %v2416_v1 = vadd.f32 %v2833_v8, %v2314_v35  ;;  %v2775_v30 = vpop.f32.mrb[18].mxu1 }
 0x4af   : > { %2449 = vst.msk [vmem:[%s4849_s23 + $0x78] sm:$0xff] %vm400_vm1, %v2417_v13  ;;  %v2329_v18 = vadd.f32 %v2775_v30, %v4841_v21  ;;  %v2323_v36 = vpop.f32.mrb[19].mxu1  ;;  %v2848_v13 = vld [vmem:[%s2935_s20 + $0xf8] sm:$0xff] }
 0x4b0   : > { %2448 = vst.msk [vmem:[%s4849_s23 + $0x70] sm:$0xff] %vm400_vm1, %v2416_v1  ;;  %v2324_v17 = vadd.f32 %v4841_v21, %v2323_v36  ;;  %v2849_v1 = vld [vmem:[%s2935_s20 + $0xf0] sm:$0xff] }
 0x4b1   : > { %v2419_v28 = vadd.f32 %v2834_v0, %v2329_v18 }
 0x4b2   : > { %v2418_v12 = vadd.f32 %v2835_v58, %v2324_v17  ;;  %v2778_v7 = vpop.f32.mrb[20].mxu1 }
 0x4b3   : > { %2451 = vst.msk [vmem:[%s4849_s23 + $0x88] sm:$0xff] %vm400_vm1, %v2419_v28  ;;  %v2339_v62 = vadd.f32 %v2778_v7, %v4841_v21  ;;  %v2333_v38 = vpop.f32.mrb[21].mxu1 }
 0x4b4   : > { %2450 = vst.msk [vmem:[%s4849_s23 + $0x80] sm:$0xff] %vm400_vm1, %v2418_v12  ;;  %v2334_v27 = vadd.f32 %v4841_v21, %v2333_v38 }
 0x4b5   : > { %v2421_v24 = vadd.f32 %v2836_v39, %v2339_v62 }
 0x4b6   : > { %v2420_v37 = vadd.f32 %v2837_v6, %v2334_v27  ;;  %v2781_v33 = vpop.f32.mrb[22].mxu1 }
 0x4b7   : > { %2453 = vst.msk [vmem:[%s4849_s23 + $0x98] sm:$0xff] %vm400_vm1, %v2421_v24  ;;  %v2349_v26 = vadd.f32 %v2781_v33, %v4841_v21  ;;  %v2343_v11 = vpop.f32.mrb[23].mxu1 }
 0x4b8   : > { %2452 = vst.msk [vmem:[%s4849_s23 + $0x90] sm:$0xff] %vm400_vm1, %v2420_v37  ;;  %v2344_v32 = vadd.f32 %v4841_v21, %v2343_v11 }
 0x4b9   : > { %v2423_v3 = vadd.f32 %v2838_v41, %v2349_v26 }
 0x4ba   : > { %v2422_v14 = vadd.f32 %v2839_v40, %v2344_v32  ;;  %v2784_v56 = vpop.f32.mrb[24].mxu1 }
 0x4bb   : > { %2455 = vst.msk [vmem:[%s4849_s23 + $0xa8] sm:$0xff] %vm400_vm1, %v2423_v3  ;;  %v2359_v25 = vadd.f32 %v2784_v56, %v4841_v21  ;;  %v2353_v48 = vpop.f32.mrb[25].mxu1 }
 0x4bc   : > { %2454 = vst.msk [vmem:[%s4849_s23 + $0xa0] sm:$0xff] %vm400_vm1, %v2422_v14  ;;  %v2354_v59 = vadd.f32 %v4841_v21, %v2353_v48 }
 0x4bd   : > { %v2425_v61 = vadd.f32 %v2840_v19, %v2359_v25 }
 0x4be   : > { %v2424_v46 = vadd.f32 %v2841_v60, %v2354_v59  ;;  %v2787_v51 = vpop.f32.mrb[26].mxu1 }
 0x4bf   : > { %2457 = vst.msk [vmem:[%s4849_s23 + $0xb8] sm:$0xff] %vm400_vm1, %v2425_v61  ;;  %v2369_v49 = vadd.f32 %v2787_v51, %v4841_v21  ;;  %v2363_v22 = vpop.f32.mrb[27].mxu1 }
 0x4c0   : > { %2456 = vst.msk [vmem:[%s4849_s23 + $0xb0] sm:$0xff] %vm400_vm1, %v2424_v46  ;;  %v2364_v16 = vadd.f32 %v4841_v21, %v2363_v22 }
 0x4c1   : > { %v2427_v44 = vadd.f32 %v2842_v50, %v2369_v49 }
 0x4c2   : > { %v2426_v45 = vadd.f32 %v2843_v2, %v2364_v16  ;;  %v2790_v4 = vpop.f32.mrb[28].mxu1 }
 0x4c3   : > { %2459 = vst.msk [vmem:[%s4849_s23 + $0xc8] sm:$0xff] %vm400_vm1, %v2427_v44  ;;  %v2379_v42 = vadd.f32 %v2790_v4, %v4841_v21  ;;  %v2373_v5 = vpop.f32.mrb[29].mxu1 }
 0x4c4   : > { %2458 = vst.msk [vmem:[%s4849_s23 + $0xc0] sm:$0xff] %vm400_vm1, %v2426_v45  ;;  %v2374_v31 = vadd.f32 %v4841_v21, %v2373_v5 }
 0x4c5   : > { %v2429_v47 = vadd.f32 %v2844_v34, %v2379_v42 }
 0x4c6   : > { %v2428_v20 = vadd.f32 %v2845_v55, %v2374_v31  ;;  %v2793_v54 = vpop.f32.mrb[30].mxu1 }
 0x4c7   : > { %2461 = vst.msk [vmem:[%s4849_s23 + $0xd8] sm:$0xff] %vm400_vm1, %v2429_v47  ;;  %v2389_v15 = vadd.f32 %v2793_v54, %v4841_v21  ;;  %v2383_v43 = vpop.f32.mrb[31].mxu1 }
 0x4c8   : > { %2460 = vst.msk [vmem:[%s4849_s23 + $0xd0] sm:$0xff] %vm400_vm1, %v2428_v20  ;;  %v2384_v63 = vadd.f32 %v4841_v21, %v2383_v43 }
 0x4c9   : > { %v2431_v53 = vadd.f32 %v2846_v23, %v2389_v15 }
 0x4ca   : > { %v2430_v29 = vadd.f32 %v2847_v52, %v2384_v63  ;;  %v2796_v9 = vpop.f32.mrb[32].mxu1 }
 0x4cb   : > { %2463 = vst.msk [vmem:[%s4849_s23 + $0xe8] sm:$0xff] %vm400_vm1, %v2431_v53  ;;  %v2399_v57 = vadd.f32 %v2796_v9, %v4841_v21  ;;  %v2393_v35 = vpop.f32.mrb[33].mxu1 }
 0x4cc   : > { %2462 = vst.msk [vmem:[%s4849_s23 + $0xe0] sm:$0xff] %vm400_vm1, %v2430_v29  ;;  %v2394_v10 = vadd.f32 %v4841_v21, %v2393_v35 }
 0x4cd   : > { %v2433_v8 = vadd.f32 %v2848_v13, %v2399_v57 }
 0x4ce   : > { %v2432_v30 = vadd.f32 %v2849_v1, %v2394_v10 }
 0x4cf   : > { %2465 = vst.msk [vmem:[%s4849_s23 + $0xf8] sm:$0xff] %vm400_vm1, %v2433_v8 }
 0x4d0   : > { %2464 = vst.msk [vmem:[%s4849_s23 + $0xf0] sm:$0xff] %vm400_vm1, %v2432_v30 }
 0x4d1 PF: > { %s20_s13 = sadd.s32 1, %s2856_s13  }
 0x4d2   : > { %p17_p4 = scmp.ge.s32.totalorder %s20_s13, 4  }
 0x4d4   :  { %19 = sbr.rel (!%p17_p4) target bundleno = 1 (0x1), region = 92 }

</bundles_post_ra>
